<compile_context>
chip_gen: v7x
topology: tpu7x:2x2x1
jax: 0.10.0
libtpu: 0.0.40
codegen_flags: <defaults>
</compile_context>

<pallas_src>
import jax
import jax.numpy as jnp
from jax.experimental import pallas as pl
from jax.experimental.pallas import tpu as pltpu

HIDDEN = 400        # logical hidden width of the PyTorch module
HIDDEN_PAD = 512    # padded to 4*128 lanes for unmasked vld/vst and full MXU columns


def _round_up(n, m):
    return ((n + m - 1) // m) * m


def _mlp_kernel(x_ref, w1_ref, b1_ref, w2_ref, b2_ref, w3_ref, b3_ref, o_ref):
    # fc1 + ReLU: bf16 x bf16 operands on the MXU, f32 accumulation.
    x = x_ref[...].astype(jnp.bfloat16)                              # (TB, F)
    h1 = jnp.dot(x, w1_ref[...], preferred_element_type=jnp.float32)
    h1 = jnp.maximum(h1 + b1_ref[...], 0.0)                          # (TB, Hp) f32

    # dropout: identity (eval mode)
    # TODO(synk): training-mode dropout mask not implemented.

    # fc2 + ReLU: quantize h1 to bf16 for the native MXU path, accumulate f32.
    h2 = jnp.dot(h1.astype(jnp.bfloat16), w2_ref[...],
                 preferred_element_type=jnp.float32)
    h2 = jnp.maximum(h2 + b2_ref[...], 0.0)                          # (TB, Hp) f32

    # fc_log_var: N=1 output -> VPU multiply + lane reduce (keeps MXU free,
    # avoids a single-column matmul). w3 is a small f32 row, b3 an SMEM scalar.
    log_var = jnp.sum(h2 * w3_ref[...], axis=-1, keepdims=True)      # (TB, 1)
    o_ref[...] = (log_var + b3_ref[0, 0]).astype(o_ref.dtype)


def student_var_only_forward(x, params, *, block_b=512):
    """Full StudentVarOnly forward pass in a single batch-tiled Pallas kernel.

    x: (B, input_size) float32
    params: dict from init_params(); weights stored (in, out), hidden padded to
            HIDDEN_PAD, w1/w2 bf16, biases f32, w3 a (1, HIDDEN_PAD) f32 row,
            b3 a (1, 1) f32 scalar.
    """
    assert block_b % 128 == 0, "block_b must be a multiple of 128"
    B, F = x.shape
    w1, b1 = params["w1"], params["b1"]     # (F, Hp) bf16, (1, Hp) f32
    w2, b2 = params["w2"], params["b2"]     # (Hp, Hp) bf16, (1, Hp) f32
    w3, b3 = params["w3"], params["b3"]     # (1, Hp) f32,  (1, 1) f32
    Hp = w1.shape[1]

    # Batch tile: multiple of 128 (fills MXU M); pad B up to whole tiles.
    tb = block_b if B >= block_b else _round_up(B, 128)
    Bp = _round_up(B, tb)
    if Bp != B:
        x = jnp.pad(x, ((0, Bp - B), (0, 0)))
    grid = (Bp // tb,)

    const2d = lambda a: pl.BlockSpec(a.shape, lambda i: (0, 0))  # VMEM-resident

    param_bytes = sum(int(a.size) * a.dtype.itemsize
                      for a in (w1, b1, w2, b2, w3, b3))
    cost = pl.CostEstimate(
        flops=int(2 * Bp * (F * Hp + Hp * Hp + Hp)),
        transcendentals=0,
        bytes_accessed=int(int(x.size) * x.dtype.itemsize + param_bytes + Bp * 4),
    )

    out = pl.pallas_call(
        _mlp_kernel,
        out_shape=jax.ShapeDtypeStruct((Bp, 1), jnp.float32),
        grid=grid,
        in_specs=[
            pl.BlockSpec((tb, F), lambda i: (i, 0)),             # x tile
            const2d(w1), const2d(b1),
            const2d(w2), const2d(b2),
            const2d(w3),
            pl.BlockSpec(memory_space=pltpu.MemorySpace.SMEM),   # b3 scalar
        ],
        out_specs=pl.BlockSpec((tb, 1), lambda i: (i, 0)),
        compiler_params=pltpu.CompilerParams(
            dimension_semantics=("parallel",)),
        cost_estimate=cost,
    )(x, w1, b1, w2, b2, w3, b3)
    return out[:B]


def init_params(key, input_size, hidden=HIDDEN, hidden_pad=HIDDEN_PAD):
    """nn.Linear-style init (uniform +-1/sqrt(fan_in)), hidden zero-padded to
    512 (numerically exact), fc1/fc2 weights quantized to bf16 for the native
    MXU path; biases and the tiny fc_log_var row stay f32."""
    k1, k2, k3, k4, k5, k6 = jax.random.split(key, 6)

    def lin(kw, kb, fan_in, fan_out):
        bound = 1.0 / (fan_in ** 0.5)
        w = jax.random.uniform(kw, (fan_in, fan_out), jnp.float32, -bound, bound)
        b = jax.random.uniform(kb, (1, fan_out), jnp.float32, -bound, bound)
        return w, b

    w1, b1 = lin(k1, k2, input_size, hidden)     # (F, 400), (1, 400)
    w2, b2 = lin(k3, k4, hidden, hidden)         # (400, 400), (1, 400)
    w3, b3 = lin(k5, k6, hidden, 1)              # (400, 1),  (1, 1)

    pad = hidden_pad - hidden
    w1 = jnp.pad(w1, ((0, 0), (0, pad)))
    b1 = jnp.pad(b1, ((0, 0), (0, pad)))
    w2 = jnp.pad(w2, ((0, pad), (0, pad)))
    b2 = jnp.pad(b2, ((0, 0), (0, pad)))
    w3 = jnp.pad(w3, ((0, pad), (0, 0))).T       # (1, 512) f32 row for VPU reduce

    return {
        "w1": w1.astype(jnp.bfloat16), "b1": b1,
        "w2": w2.astype(jnp.bfloat16), "b2": b2,
        "w3": w3, "b3": b3,
    }


def _reference_forward(x, p):
    """Plain-JAX reference using the same bf16 operands / f32 accumulation."""
    h1 = jnp.maximum(
        jnp.dot(x.astype(jnp.bfloat16), p["w1"],
                preferred_element_type=jnp.float32) + p["b1"], 0.0)
    h2 = jnp.maximum(
        jnp.dot(h1.astype(jnp.bfloat16), p["w2"],
                preferred_element_type=jnp.float32) + p["b2"], 0.0)
    return jnp.sum(h2 * p["w3"], axis=-1, keepdims=True) + p["b3"]


if __name__ == "__main__":
    key = jax.random.PRNGKey(0)
    k_x, k_p = jax.random.split(key)

    batch = 300        # padded to 384 -> 3 batch tiles of 128 (multi-step grid)
    input_size = 16    # small synthetic feature count (telemonitoring-style)

    x = jax.random.normal(k_x, (batch, input_size), dtype=jnp.float32)
    params = init_params(k_p, input_size)

    log_var = student_var_only_forward(x, params, block_b=128)
    log_var = jax.block_until_ready(log_var)

    ref = _reference_forward(x, params)
    assert log_var.shape == (batch, 1), log_var.shape
    err = float(jnp.max(jnp.abs(log_var - ref)))
    assert jnp.allclose(log_var, ref, atol=2e-2, rtol=2e-2), f"mismatch: {err}"

    print("KERNEL_OK")
</pallas_src>

<mosaic_0001>
module attributes {stable_mosaic.version = 11 : i64} {
  func.func @_mlp_kernel(%arg0: i32, %arg1: memref<128x16xf32, #tpu.memory_space<vmem>>, %arg2: memref<16x512xbf16, #tpu.memory_space<vmem>>, %arg3: memref<1x512xf32, #tpu.memory_space<vmem>>, %arg4: memref<512x512xbf16, #tpu.memory_space<vmem>>, %arg5: memref<1x512xf32, #tpu.memory_space<vmem>>, %arg6: memref<1x512xf32, #tpu.memory_space<vmem>>, %arg7: memref<1x1xf32, #tpu.memory_space<smem>>, %arg8: memref<128x1xf32, #tpu.memory_space<vmem>>) attributes {dimension_semantics = [#tpu.dimension_semantics<parallel>], iteration_bounds = array<i64: 3>, scalar_prefetch = 0 : i64, scratch_operands = 0 : i64, tpu.core_type = #tpu.core_type<tc>, window_params = [{transform_indices = @transform_0, window_bounds = array<i64: 128, 16>}, {pipeline_mode = #tpu.pipeline_mode<synchronous>, transform_indices = @transform_1, window_bounds = array<i64: 16, 512>}, {pipeline_mode = #tpu.pipeline_mode<synchronous>, transform_indices = @transform_2, window_bounds = array<i64: 1, 512>}, {pipeline_mode = #tpu.pipeline_mode<synchronous>, transform_indices = @transform_3, window_bounds = array<i64: 512, 512>}, {pipeline_mode = #tpu.pipeline_mode<synchronous>, transform_indices = @transform_4, window_bounds = array<i64: 1, 512>}, {pipeline_mode = #tpu.pipeline_mode<synchronous>, transform_indices = @transform_5, window_bounds = array<i64: 1, 512>}, {transform_indices = @transform_6, window_bounds = array<i64: 1, 1>}, {transform_indices = @transform_7, window_bounds = array<i64: 128, 1>}]} {
    %c0 = arith.constant 0 : index
    %c0_0 = arith.constant 0 : index
    %0 = vector.load %arg1[%c0, %c0_0] : memref<128x16xf32, #tpu.memory_space<vmem>>, vector<128x16xf32>
    %1 = arith.truncf %0 : vector<128x16xf32> to vector<128x16xbf16>
    %c0_1 = arith.constant 0 : index
    %c0_2 = arith.constant 0 : index
    %2 = vector.load %arg2[%c0_1, %c0_2] : memref<16x512xbf16, #tpu.memory_space<vmem>>, vector<16x512xbf16>
    %cst = arith.constant dense<0.000000e+00> : vector<128x512xf32>
    %3 = tpu.matmul %1, %2, %cst {dimension_numbers = #tpu.dot_dimension_numbers<[1], [0], [0], [1], [0, 0, 1, 1], [], []>} : vector<128x16xbf16>, vector<16x512xbf16>, vector<128x512xf32> -> vector<128x512xf32>
    %c0_3 = arith.constant 0 : index
    %c0_4 = arith.constant 0 : index
    %4 = vector.load %arg3[%c0_3, %c0_4] : memref<1x512xf32, #tpu.memory_space<vmem>>, vector<1x512xf32>
    %5 = vector.broadcast %4 : vector<1x512xf32> to vector<128x512xf32>
    %6 = arith.addf %3, %5 : vector<128x512xf32>
    %cst_5 = arith.constant 0.000000e+00 : f32
    %7 = vector.broadcast %cst_5 : f32 to vector<128x512xf32>
    %8 = arith.maximumf %6, %7 : vector<128x512xf32>
    %9 = arith.truncf %8 : vector<128x512xf32> to vector<128x512xbf16>
    %c0_6 = arith.constant 0 : index
    %c0_7 = arith.constant 0 : index
    %10 = vector.load %arg4[%c0_6, %c0_7] : memref<512x512xbf16, #tpu.memory_space<vmem>>, vector<512x512xbf16>
    %cst_8 = arith.constant dense<0.000000e+00> : vector<128x512xf32>
    %11 = tpu.matmul %9, %10, %cst_8 {dimension_numbers = #tpu.dot_dimension_numbers<[1], [0], [0], [1], [0, 0, 1, 1], [], []>} : vector<128x512xbf16>, vector<512x512xbf16>, vector<128x512xf32> -> vector<128x512xf32>
    %c0_9 = arith.constant 0 : index
    %c0_10 = arith.constant 0 : index
    %12 = vector.load %arg5[%c0_9, %c0_10] : memref<1x512xf32, #tpu.memory_space<vmem>>, vector<1x512xf32>
    %13 = vector.broadcast %12 : vector<1x512xf32> to vector<128x512xf32>
    %14 = arith.addf %11, %13 : vector<128x512xf32>
    %cst_11 = arith.constant 0.000000e+00 : f32
    %15 = vector.broadcast %cst_11 : f32 to vector<128x512xf32>
    %16 = arith.maximumf %14, %15 : vector<128x512xf32>
    %c0_12 = arith.constant 0 : index
    %c0_13 = arith.constant 0 : index
    %17 = vector.load %arg6[%c0_12, %c0_13] : memref<1x512xf32, #tpu.memory_space<vmem>>, vector<1x512xf32>
    %18 = vector.broadcast %17 : vector<1x512xf32> to vector<128x512xf32>
    %19 = arith.mulf %16, %18 : vector<128x512xf32>
    %cst_14 = arith.constant dense<0.000000e+00> : vector<128xf32>
    %20 = vector.multi_reduction <add>, %19, %cst_14 [1] : vector<128x512xf32> to vector<128xf32>
    %21 = vector.shape_cast %20 : vector<128xf32> to vector<128x1xf32>
    %c0_15 = arith.constant 0 : index
    %c0_16 = arith.constant 0 : index
    %22 = memref.load %arg7[%c0_15, %c0_16] : memref<1x1xf32, #tpu.memory_space<smem>>
    %23 = vector.broadcast %22 : f32 to vector<128x1xf32>
    %24 = arith.addf %21, %23 : vector<128x1xf32>
    %c0_17 = arith.constant 0 : index
    %c0_18 = arith.constant 0 : index
    %25 = vector.load %arg8[%c0_17, %c0_18] : memref<128x1xf32, #tpu.memory_space<vmem>>, vector<128x1xf32>
    tpu.vector_store %arg8[%c0_17, %c0_18], %24 {strides = array<i32>} : memref<128x1xf32, #tpu.memory_space<vmem>>, vector<128x1xf32>,
    return
  }
  func.func @transform_0(%arg0: i32) -> (i32, i32) {
    %c0_i32 = arith.constant 0 : i32
    %c0_i32_0 = arith.constant 0 : i32
    return %arg0, %c0_i32 : i32, i32
  }
  func.func @transform_1(%arg0: i32) -> (i32, i32) {
    %c0_i32 = arith.constant 0 : i32
    %c0_i32_0 = arith.constant 0 : i32
    %c0_i32_1 = arith.constant 0 : i32
    return %c0_i32, %c0_i32_0 : i32, i32
  }
  func.func @transform_2(%arg0: i32) -> (i32, i32) {
    %c0_i32 = arith.constant 0 : i32
    %c0_i32_0 = arith.constant 0 : i32
    %c0_i32_1 = arith.constant 0 : i32
    return %c0_i32, %c0_i32_0 : i32, i32
  }
  func.func @transform_3(%arg0: i32) -> (i32, i32) {
    %c0_i32 = arith.constant 0 : i32
    %c0_i32_0 = arith.constant 0 : i32
    %c0_i32_1 = arith.constant 0 : i32
    return %c0_i32, %c0_i32_0 : i32, i32
  }
  func.func @transform_4(%arg0: i32) -> (i32, i32) {
    %c0_i32 = arith.constant 0 : i32
    %c0_i32_0 = arith.constant 0 : i32
    %c0_i32_1 = arith.constant 0 : i32
    return %c0_i32, %c0_i32_0 : i32, i32
  }
  func.func @transform_5(%arg0: i32) -> (i32, i32) {
    %c0_i32 = arith.constant 0 : i32
    %c0_i32_0 = arith.constant 0 : i32
    %c0_i32_1 = arith.constant 0 : i32
    return %c0_i32, %c0_i32_0 : i32, i32
  }
  func.func @transform_6(%arg0: i32) -> (i32, i32) {
    %c0_i32 = arith.constant 0 : i32
    %c0_i32_0 = arith.constant 0 : i32
    %c0_i32_1 = arith.constant 0 : i32
    return %c0_i32, %c0_i32_0 : i32, i32
  }
  func.func @transform_7(%arg0: i32) -> (i32, i32) {
    %c0_i32 = arith.constant 0 : i32
    %c0_i32_0 = arith.constant 0 : i32
    return %arg0, %c0_i32 : i32, i32
  }
}

</mosaic_0001>

<bundles_post_ra>
// kernel: tpu_custom_call.1
= control target key start
LH: loop header
LB: loop body
LE: loop exit
PB: predicated region body
PF: predicated region fallthrough
CT: control target
= control target key end

     0   :  { %s3346_s0 = inlined_call_operand.vmem [shape: f32[384,16], index: 0, kind: input, shape index: {}]   ;;  %s3347_s1 = inlined_call_operand.vmem [shape: bf16[16,512], index: 1, kind: input, shape index: {}]   ;;  %s3348_s2 = inlined_call_operand.vmem [shape: f32[1,512], index: 2, kind: input, shape index: {}]   ;;  %s3349_s3 = inlined_call_operand.hbm [shape: bf16[512,512], index: 3, kind: input, shape index: {}]   ;;  %s3350_s4 = inlined_call_operand.vmem [shape: f32[1,512], index: 4, kind: input, shape index: {}]   ;;  %s3351_s5 = inlined_call_operand.vmem [shape: f32[1,512], index: 5, kind: input, shape index: {}]   ;;  %s3352_s6 = inlined_call_operand.<no memory space> [shape: f32[1,1], index: 6, kind: input, shape index: {}]   ;;  %s3353_s7 = inlined_call_operand.vmem [shape: f32[384,1], index: 7, kind: output, shape index: {}]  }
   0x1   :  { %12 = sst [smem:[#allocation2]] %s3352_s6 }
   0x2   :  { %13 = vsyncpa [#allocation4], 0  ;;  %s2887_s26 = smov 0  }
   0x3 LB: > { %s2291_s27 = sadd.s32 4294967295, %s2838_s26   ;;  %p2293_p0 = scmp.ge.s32.totalorder %s2838_s26, 1  ;;  %s2838_s26 = sphi %s2887_s26, %s19_s26  }
   0x4   : > { %p202_p1 = scmp.lt.s32.totalorder %s2838_s26, 4  ;;  %s2840_s28 = smov [#allocation3]  }
   0x5   : > { %s220_s29 = sshll.u32 %s2840_s28, 4  ;;  %p2901_p3 = scmp.eq.s32.totalorder %s2291_s27, 0  ;;  %s221_s29 = int_to_ptr.vmem [resolvable:$true] %s220_s29 }
   0x6   : > { %p2895_p2 = pnand %p2293_p0, %p202_p1  ;;  %s2800_s11 = scalar_lea.hbm %s3349_s3, 16384 }
   0x7   : > { %s3358_s6 = scalar_select %p2901_p3, 1, 0 }
   0x8   : > { %s3357_s30 = scalar_select %p2895_p2, 1, 0 }
   0x9   : > { %p2584_p4 = pneg %p2895_p2  ;;  %p2801_p6 = scmp.ne.s32.totalorder %s3349_s3, %s2800_s11 }
   0xa   : > { %p2807_p10 = scmp.lt.u32.totalorder %s2800_s11, %s3349_s3 }
   0xb   : > { %p2909_p5 = pnand %p2901_p3, %p2584_p4 }
   0xd   : > { %p2802_p7 = pneg %p2909_p5 }
   0xf   : > { %p2803_p8 = pnand %p2802_p7, %p2801_p6 }
  0x11   : > { %p2804_p9 = pneg %p2803_p8 }
  0x13   : > { %p2809_p11 = pnand %p2807_p10, %p2804_p9 }
  0x15   : > { %2812 = shalt.err (!%p2809_p11)
}
  0x16   : > { %s2813_s16 = scalar_lea.vmem %s221_s29, 16384  ;;  %p2821_p1 = scmp.lt.s32.totalorder %s221_s29, %s221_s29 }
  0x17   : > { %p2814_p12 = scmp.ne.s32.totalorder %s221_s29, %s2813_s16  ;;  %p2822_p4 = scmp.lt.s32.totalorder %s2813_s16, %s2813_s16 }
  0x19   : > { %p2816_p13 = pnand %p2814_p12, %p2802_p7  ;;  %p2823_p3 = por %p2822_p4, %p2821_p1 }
  0x1b   : > { %p2817_p0 = pneg %p2816_p13 }
  0x1d   : > { %p2824_p2 = pnand %p2823_p3, %p2817_p0 }
  0x1f   : > { %2827 = shalt.err (!%p2824_p2)
}
  0x20   : > { %s2841_s17 = smov 256   ;;  %s2842_s18 = smov 16  }
  0x21   : > { %2587 = dma.hbm_to_vmem [thread:$0]  (!%p2909_p5), %s3349_s3, 16384, %s221_s29, [#allocation4], %s2841_s17, %s2841_s17, %s2842_s18  }
  0x22   : > { %p3360_p6 = scmp.ne.s32.totalorder %s3357_s30, 0 }
  0x23   : > { %p3361_p8 = scmp.ne.s32.totalorder (!%p3360_p6), %s3358_s6, 0 }
  0x24   : > { %254 = sbr.rel (%p3360_p6) target bundleno = 767 (0x2ff), region = 48 }
  0x2b   : > { %2833 = dma.done.wait (%p3361_p8), [#allocation4], 16384  }
  0x2c   : > { %2835 = vsyncadd (%p3361_p8), [#allocation4], 4294950912  ;;  %s2298_s21 = sshll.u32 %s2291_s27, 4  ;;  %v2843_v0 = vmov 0   ;;  %v2602_v1 = vld [vmem:[%s3347_s1 + $0x4] ss:$16 sps:$4 sm:$0xff]  }
  0x2d   : > { %426 = vmatprep.mubr.bf16.mxu0 %v2843_v0  ;;  %p287_p2 = scmp.lt.s32.totalorder %s2298_s21, 47  ;;  %539 = vmatprep.mubr.bf16.mxu1 %v2843_v0  ;;  %v2604_v2 = vld [vmem:[%s3347_s1] ss:$16 sps:$4 sm:$0xff]   ;;  %vm369_vm0 = vcmask 130048   ;;  %v2605_v8 = vld [vmem:[%s3347_s1 + $0xc] ss:$16 sps:$4 sm:$0xff]  }
  0x2e   : > { %394 = vmatprep.subr.bf16.mxu0 %v2602_v1  ;;  %v2607_v9 = vld [vmem:[%s3347_s1 + $0x8] ss:$16 sps:$4 sm:$0xff]   ;;  %v2608_v10 = vld [vmem:[#allocation3] ss:$16 sps:$4 sm:$0xff]   ;;  %507 = vmatprep.subr.bf16.mxu1 %v2605_v8  ;;  %v2610_v11 = vld [vmem:[#allocation3 + $0x4] ss:$16 sps:$4 sm:$0xff]  }
  0x2f   : > { %s3363_s21 = smov (!%p287_p2, %s2298_s21), 47  ;;  %395 = vmatpush1.bf16.msra.mxu0 %v2604_v2  ;;  %508 = vmatpush1.bf16.msra.mxu1 %v2607_v9  ;;  %v2613_v13 = vld [vmem:[#allocation3 + $0xc] ss:$16 sps:$4 sm:$0xff]   ;;  %v2611_v14 = vld [vmem:[#allocation3 + $0x8] ss:$16 sps:$4 sm:$0xff]   ;;  %s2188_s17 = sld [smem:[#allocation2]] }
  0x30   : > { %s2299_s22 = sshll.u32 %s3363_s21, 3  ;;  %1506 = vmatprep.subr.bf16.mxu0 %v2610_v11  ;;  %v2616_v15 = vld [vmem:[#allocation3 + $0x24] ss:$16 sps:$4 sm:$0xff]   ;;  %1732 = vmatprep.subr.bf16.mxu1 %v2613_v13  ;;  %v2614_v16 = vld [vmem:[#allocation3 + $0x20] ss:$16 sps:$4 sm:$0xff]   ;;  %vm2206_vm1 = vcmask 7168  }
  0x31   : > { %s2947_s25 = scalar_lea.vmem %s3346_s0, %s2299_s22  ;;  %v2619_v18 = vld [vmem:[#allocation3 + $0x2c] ss:$16 sps:$4 sm:$0xff]   ;;  %v2622_v20 = vld [vmem:[#allocation3 + $0x44] ss:$16 sps:$4 sm:$0xff]   ;;  %v2617_v21 = vld [vmem:[#allocation3 + $0x28] ss:$16 sps:$4 sm:$0xff]   ;;  %s3309_s20 = scalar_lea.vmem %s3353_s7, %s2299_s22 }
  0x32   : > { %v299_v3 = vld [vmem:[%s2947_s25] sm:$0xff]  ;;  %v300_v4 = vld [vmem:[%s2947_s25 + $0x8] sm:$0xff]  ;;  %v301_v6 = vld [vmem:[%s2947_s25 + $0x10] sm:$0xff] }
  0x33   : > { %v315_v5 = vpack.c.bf16 %v300_v4, %v299_v3  ;;  %v302_v7 = vld [vmem:[%s2947_s25 + $0x18] sm:$0xff]  ;;  %v303_v17 = vld [vmem:[%s2947_s25 + $0x20] sm:$0xff]  ;;  %v304_v19 = vld [vmem:[%s2947_s25 + $0x28] sm:$0xff] }
  0x34   : > { %v316_v12 = vpack.c.bf16 %v302_v7, %v301_v6  ;;  %v2620_v22 = vld [vmem:[#allocation3 + $0x40] ss:$16 sps:$4 sm:$0xff]   ;;  %v2625_v23 = vld [vmem:[#allocation3 + $0x4c] ss:$16 sps:$4 sm:$0xff]   ;;  %v2628_v24 = vld [vmem:[#allocation3 + $0x64] ss:$16 sps:$4 sm:$0xff]   ;;  %v317_v25 = vpack.c.bf16 %v304_v19, %v303_v17 }
  0x35   : > { %2306 = vmatmul.mubr.msk.bf16.vlgmr.msra.gmra.mrb[0].mxu0 %vm369_vm0, %v315_v5  ;;  %2314 = vmatmul.mubr.msk.bf16.vlgmr.msra.gmra.mrb[0].mxu1 %vm369_vm0, %v315_v5  ;;  %v2623_v26 = vld [vmem:[#allocation3 + $0x48] ss:$16 sps:$4 sm:$0xff]   ;;  %v2626_v27 = vld [vmem:[#allocation3 + $0x60] ss:$16 sps:$4 sm:$0xff]   ;;  %v2631_v28 = vld [vmem:[#allocation3 + $0x6c] ss:$16 sps:$4 sm:$0xff]  }
  0x36   : > { %436 = vmatprep.mubr.bf16.mxu0 %v2843_v0  ;;  %1507 = vmatpush1.bf16.msra.mxu0 %v2608_v10  ;;  %v2634_v29 = vld [vmem:[#allocation3 + $0x84] ss:$16 sps:$4 sm:$0xff]   ;;  %v306_v31 = vld [vmem:[%s2947_s25 + $0x38] sm:$0xff]  ;;  %v2632_v33 = vld [vmem:[#allocation3 + $0x80] ss:$16 sps:$4 sm:$0xff]  }
  0x37   : > { %1508 = vmatprep.subr.bf16.mxu0 %v2616_v15  ;;  %549 = vmatprep.mubr.bf16.mxu1 %v2843_v0  ;;  %v305_v30 = vld [vmem:[%s2947_s25 + $0x30] sm:$0xff]  ;;  %v2629_v32 = vld [vmem:[#allocation3 + $0x68] ss:$16 sps:$4 sm:$0xff]   ;;  %v2637_v34 = vld [vmem:[#allocation3 + $0x8c] ss:$16 sps:$4 sm:$0xff]  }
  0x38   : > { %1733 = vmatpush1.bf16.msra.mxu1 %v2611_v14  ;;  %v2640_v35 = vld [vmem:[#allocation3 + $0xa4] ss:$16 sps:$4 sm:$0xff]   ;;  %v318_v36 = vpack.c.bf16 %v306_v31, %v305_v30  ;;  %v2635_v37 = vld [vmem:[#allocation3 + $0x88] ss:$16 sps:$4 sm:$0xff]   ;;  %v2638_v38 = vld [vmem:[#allocation3 + $0xa0] ss:$16 sps:$4 sm:$0xff]   ;;  %v329_v31 = vlaneseq }
  0x39   : > { %1734 = vmatprep.subr.bf16.mxu1 %v2619_v18  ;;  %v2643_v39 = vld [vmem:[#allocation3 + $0xac] ss:$16 sps:$4 sm:$0xff]   ;;  %v2646_v40 = vld [vmem:[#allocation3 + $0xc4] ss:$16 sps:$4 sm:$0xff]   ;;  %v2641_v43 = vld [vmem:[#allocation3 + $0xa8] ss:$16 sps:$4 sm:$0xff]  }
  0x3a   : > { %1509 = vmatpush1.bf16.msra.mxu0 %v2614_v16  ;;  %v307_v41 = vld [vmem:[%s2947_s25 + $0x40] sm:$0xff]  ;;  %v308_v42 = vld [vmem:[%s2947_s25 + $0x48] sm:$0xff]  ;;  %v309_v52 = vld [vmem:[%s2947_s25 + $0x50] sm:$0xff] }
  0x3b   : > { %1510 = vmatprep.subr.bf16.mxu0 %v2622_v20  ;;  %v2644_v44 = vld [vmem:[#allocation3 + $0xc0] ss:$16 sps:$4 sm:$0xff]   ;;  %v2649_v45 = vld [vmem:[#allocation3 + $0xcc] ss:$16 sps:$4 sm:$0xff]   ;;  %v2652_v46 = vld [vmem:[#allocation3 + $0xe4] ss:$16 sps:$4 sm:$0xff]   ;;  %v319_v47 = vpack.c.bf16 %v308_v42, %v307_v41 }
  0x3c   : > { %1735 = vmatpush1.bf16.msra.mxu1 %v2617_v21  ;;  %v2647_v48 = vld [vmem:[#allocation3 + $0xc8] ss:$16 sps:$4 sm:$0xff]   ;;  %v2650_v49 = vld [vmem:[#allocation3 + $0xe0] ss:$16 sps:$4 sm:$0xff]   ;;  %v2655_v50 = vld [vmem:[#allocation3 + $0xec] ss:$16 sps:$4 sm:$0xff]  }
  0x3d   : > { %2307 = vmatmul.mubr.msk.bf16.gmra.mrb[4].mxu0 %vm369_vm0, %v316_v12  ;;  %1736 = vmatprep.subr.bf16.mxu1 %v2625_v23  ;;  %v2658_v51 = vld [vmem:[#allocation3 + $0x104] ss:$16 sps:$4 sm:$0xff]   ;;  %v310_v53 = vld [vmem:[%s2947_s25 + $0x58] sm:$0xff]  ;;  %v2656_v55 = vld [vmem:[#allocation3 + $0x100] ss:$16 sps:$4 sm:$0xff]  }
  0x3e   : > { %446 = vmatprep.mubr.bf16.mxu0 %v2843_v0  ;;  %1511 = vmatpush1.bf16.msra.mxu0 %v2620_v22  ;;  %v2653_v54 = vld [vmem:[#allocation3 + $0xe8] ss:$16 sps:$4 sm:$0xff]   ;;  %v2661_v56 = vld [vmem:[#allocation3 + $0x10c] ss:$16 sps:$4 sm:$0xff]   ;;  %v2664_v57 = vld [vmem:[#allocation3 + $0x124] ss:$16 sps:$4 sm:$0xff]   ;;  %v320_v58 = vpack.c.bf16 %v310_v53, %v309_v52 }
  0x3f   : > { %2315 = vmatmul.mubr.msk.bf16.gmra.mrb[4].mxu1 %vm369_vm0, %v316_v12  ;;  %1512 = vmatprep.subr.bf16.mxu0 %v2628_v24  ;;  %v2659_v59 = vld [vmem:[#allocation3 + $0x108] ss:$16 sps:$4 sm:$0xff]   ;;  %v2662_v60 = vld [vmem:[#allocation3 + $0x120] ss:$16 sps:$4 sm:$0xff]   ;;  %v2667_v61 = vld [vmem:[#allocation3 + $0x12c] ss:$16 sps:$4 sm:$0xff]  }
  0x40   : > { %559 = vmatprep.mubr.bf16.mxu1 %v2843_v0  ;;  %1737 = vmatpush1.bf16.msra.mxu1 %v2623_v26  ;;  %v311_v62 = vld [vmem:[%s2947_s25 + $0x60] sm:$0xff]  ;;  %v312_v63 = vld [vmem:[%s2947_s25 + $0x68] sm:$0xff]  ;;  %v313_v11 = vld [vmem:[%s2947_s25 + $0x70] sm:$0xff] }
  0x41   : > { %1738 = vmatprep.subr.bf16.mxu1 %v2631_v28  ;;  %v2665_v1 = vld [vmem:[#allocation3 + $0x128] ss:$16 sps:$4 sm:$0xff]   ;;  %v2670_v2 = vld [vmem:[#allocation3 + $0x144] ss:$16 sps:$4 sm:$0xff]   ;;  %v2668_v3 = vld [vmem:[#allocation3 + $0x140] ss:$16 sps:$4 sm:$0xff]   ;;  %v321_v7 = vpack.c.bf16 %v312_v63, %v311_v62 }
  0x42   : > { %1513 = vmatpush1.bf16.msra.mxu0 %v2626_v27  ;;  %v2673_v4 = vld [vmem:[#allocation3 + $0x14c] ss:$16 sps:$4 sm:$0xff]   ;;  %v2676_v5 = vld [vmem:[#allocation3 + $0x164] ss:$16 sps:$4 sm:$0xff]   ;;  %v2671_v6 = vld [vmem:[#allocation3 + $0x148] ss:$16 sps:$4 sm:$0xff]  }
  0x43   : > { %1514 = vmatprep.subr.bf16.mxu0 %v2634_v29  ;;  %v2674_v8 = vld [vmem:[#allocation3 + $0x160] ss:$16 sps:$4 sm:$0xff]   ;;  %v2679_v9 = vld [vmem:[#allocation3 + $0x16c] ss:$16 sps:$4 sm:$0xff]   ;;  %v2682_v10 = vld [vmem:[#allocation3 + $0x184] ss:$16 sps:$4 sm:$0xff]  }
  0x44   : > { %1739 = vmatpush1.bf16.msra.mxu1 %v2629_v32  ;;  %v314_v12 = vld [vmem:[%s2947_s25 + $0x78] sm:$0xff]  ;;  %v2680_v14 = vld [vmem:[#allocation3 + $0x180] ss:$16 sps:$4 sm:$0xff]   ;;  %v2688_v16 = vld [vmem:[#allocation3 + $0x1a4] ss:$16 sps:$4 sm:$0xff]   ;;  %v330_v32 = vshrl.u32 %v329_v31, 7 }
  0x45   : > { %2308 = vmatmul.mubr.msk.bf16.gmra.mrb[8].mxu0 %vm369_vm0, %v317_v25  ;;  %1740 = vmatprep.subr.bf16.mxu1 %v2637_v34  ;;  %v2677_v13 = vld [vmem:[#allocation3 + $0x168] ss:$16 sps:$4 sm:$0xff]   ;;  %v2685_v15 = vld [vmem:[#allocation3 + $0x18c] ss:$16 sps:$4 sm:$0xff]   ;;  %v322_v18 = vpack.c.bf16 %v314_v12, %v313_v11  ;;  %v2686_v19 = vld [vmem:[#allocation3 + $0x1a0] ss:$16 sps:$4 sm:$0xff]  }
  0x46   : > { %456 = vmatprep.mubr.bf16.mxu0 %v2843_v0  ;;  %1515 = vmatpush1.bf16.msra.mxu0 %v2632_v33  ;;  %v2683_v17 = vld [vmem:[#allocation3 + $0x188] ss:$16 sps:$4 sm:$0xff]   ;;  %v2691_v20 = vld [vmem:[#allocation3 + $0x1ac] ss:$16 sps:$4 sm:$0xff]   ;;  %v2694_v22 = vld [vmem:[#allocation3 + $0x1c4] ss:$16 sps:$4 sm:$0xff]  }
  0x47   : > { %2316 = vmatmul.mubr.msk.bf16.gmra.mrb[8].mxu1 %vm369_vm0, %v317_v25  ;;  %1516 = vmatprep.subr.bf16.mxu0 %v2640_v35  ;;  %v2689_v21 = vld [vmem:[#allocation3 + $0x1a8] ss:$16 sps:$4 sm:$0xff]   ;;  %v2697_v23 = vld [vmem:[#allocation3 + $0x1cc] ss:$16 sps:$4 sm:$0xff]   ;;  %v2692_v24 = vld [vmem:[#allocation3 + $0x1c0] ss:$16 sps:$4 sm:$0xff]  }
  0x48   : > { %569 = vmatprep.mubr.bf16.mxu1 %v2843_v0  ;;  %1741 = vmatpush1.bf16.msra.mxu1 %v2635_v37  ;;  %v2695_v25 = vld [vmem:[#allocation3 + $0x1c8] ss:$16 sps:$4 sm:$0xff]   ;;  %v2700_v26 = vld [vmem:[#allocation3 + $0x1e4] ss:$16 sps:$4 sm:$0xff]   ;;  %v2703_v27 = vld [vmem:[#allocation3 + $0x1ec] ss:$16 sps:$4 sm:$0xff]  }
  0x49   : > { %1742 = vmatprep.subr.bf16.mxu1 %v2643_v39  ;;  %v2698_v28 = vld [vmem:[#allocation3 + $0x1e0] ss:$16 sps:$4 sm:$0xff]   ;;  %v2701_v29 = vld [vmem:[#allocation3 + $0x1e8] ss:$16 sps:$4 sm:$0xff]   ;;  %v2709_v30 = vld [vmem:[#allocation3 + $0x20c] ss:$16 sps:$4 sm:$0xff]  }
  0x4a   : > { %1517 = vmatpush1.bf16.msra.mxu0 %v2638_v38  ;;  %v3007_v33 = vsub.s32 0, %v330_v32  ;;  %v327_v34 = vld [vmem:[%s3348_s2] sm:$0xf]  ;;  %v3012_v35 = vsub.s32 1, %v330_v32  ;;  %v3020_v39 = vsub.s32 2, %v330_v32  ;;  %v3023_v42 = vsub.s32 3, %v330_v32 }
  0x4b   : > { %1518 = vmatprep.subr.bf16.mxu0 %v2646_v40  ;;  %v2710_v12 = vld [vmem:[#allocation3 + $0x220] ss:$16 sps:$4 sm:$0xff]   ;;  %v2719_v31 = vld [vmem:[#allocation3 + $0x248] ss:$16 sps:$4 sm:$0xff]  }
  0x4c   : > { %1743 = vmatpush1.bf16.msra.mxu1 %v2641_v43  ;;  %v3018_v37 = vrot.slane %v327_v34, %v3012_v35 }
  0x4d   : > { %2309 = vmatmul.mubr.msk.bf16.gmra.mrb[12].mxu0 %vm369_vm0, %v318_v36  ;;  %1744 = vmatprep.subr.bf16.mxu1 %v2649_v45 }
  0x4e   : > { %466 = vmatprep.mubr.bf16.mxu0 %v2843_v0  ;;  %1519 = vmatpush1.bf16.msra.mxu0 %v2644_v44 }
  0x4f   : > { %2317 = vmatmul.mubr.msk.bf16.gmra.mrb[12].mxu1 %vm369_vm0, %v318_v36  ;;  %1520 = vmatprep.subr.bf16.mxu0 %v2652_v46  ;;  %v3015_v36 = vrot.slane %v327_v34, %v3007_v33 }
  0x50   : > { %579 = vmatprep.mubr.bf16.mxu1 %v2843_v0  ;;  %1745 = vmatpush1.bf16.msra.mxu1 %v2647_v48  ;;  %v3029_v48 = vrot.slane %v327_v34, %v3020_v39 }
  0x51   : > { %1746 = vmatprep.subr.bf16.mxu1 %v2655_v50 }
  0x52   : > { %1521 = vmatpush1.bf16.msra.mxu0 %v2650_v49 }
  0x53   : > { %1522 = vmatprep.subr.bf16.mxu0 %v2658_v51  ;;  %v3032_v51 = vrot.slane %v327_v34, %v3023_v42 }
  0x54   : > { %1747 = vmatpush1.bf16.msra.mxu1 %v2653_v54 }
  0x55   : > { %2310 = vmatmul.mubr.msk.bf16.gmra.mrb[16].mxu0 %vm369_vm0, %v319_v47  ;;  %1748 = vmatprep.subr.bf16.mxu1 %v2661_v56 }
  0x56   : > { %476 = vmatprep.mubr.bf16.mxu0 %v2843_v0  ;;  %1523 = vmatpush1.bf16.msra.mxu0 %v2656_v55 }
  0x57   : > { %2318 = vmatmul.mubr.msk.bf16.gmra.mrb[16].mxu1 %vm369_vm0, %v319_v47  ;;  %1524 = vmatprep.subr.bf16.mxu0 %v2664_v57 }
  0x58   : > { %589 = vmatprep.mubr.bf16.mxu1 %v2843_v0  ;;  %1749 = vmatpush1.bf16.msra.mxu1 %v2659_v59  ;;  %v2707_v59 = vld [vmem:[#allocation3 + $0x208] ss:$16 sps:$4 sm:$0xff]  }
  0x59   : > { %1750 = vmatprep.subr.bf16.mxu1 %v2667_v61 }
  0x5a   : > { %1525 = vmatpush1.bf16.msra.mxu0 %v2662_v60 }
  0x5b   : > { %1526 = vmatprep.subr.bf16.mxu0 %v2670_v2  ;;  %v2715_v2 = vld [vmem:[#allocation3 + $0x22c] ss:$16 sps:$4 sm:$0xff]  }
  0x5c   : > { %1751 = vmatpush1.bf16.msra.mxu1 %v2665_v1  ;;  %v2712_v1 = vld [vmem:[#allocation3 + $0x224] ss:$16 sps:$4 sm:$0xff]  }
  0x5d   : > { %2311 = vmatmul.mubr.msk.bf16.gmra.mrb[20].mxu0 %vm369_vm0, %v320_v58  ;;  %1752 = vmatprep.subr.bf16.mxu1 %v2673_v4 }
  0x5e   : > { %486 = vmatprep.mubr.bf16.mxu0 %v2843_v0  ;;  %1527 = vmatpush1.bf16.msra.mxu0 %v2668_v3 }
  0x5f   : > { %2319 = vmatmul.mubr.msk.bf16.gmra.mrb[20].mxu1 %vm369_vm0, %v320_v58  ;;  %1528 = vmatprep.subr.bf16.mxu0 %v2676_v5  ;;  %v2704_v58 = vld [vmem:[#allocation3 + $0x200] ss:$16 sps:$4 sm:$0xff]  }
  0x60   : > { %599 = vmatprep.mubr.bf16.mxu1 %v2843_v0  ;;  %1753 = vmatpush1.bf16.msra.mxu1 %v2671_v6 }
  0x61   : > { %1754 = vmatprep.subr.bf16.mxu1 %v2679_v9 }
  0x62   : > { %1529 = vmatpush1.bf16.msra.mxu0 %v2674_v8 }
  0x63   : > { %1530 = vmatprep.subr.bf16.mxu0 %v2682_v10 }
  0x64   : > { %1755 = vmatpush1.bf16.msra.mxu1 %v2677_v13 }
  0x65   : > { %2312 = vmatmul.mubr.msk.bf16.gmra.mrb[24].mxu0 %vm369_vm0, %v321_v7  ;;  %1756 = vmatprep.subr.bf16.mxu1 %v2685_v15 }
  0x66   : > { %496 = vmatprep.mubr.bf16.mxu0 %v2843_v0  ;;  %1531 = vmatpush1.bf16.msra.mxu0 %v2680_v14 }
  0x67   : > { %2320 = vmatmul.mubr.msk.bf16.gmra.mrb[24].mxu1 %vm369_vm0, %v321_v7  ;;  %1532 = vmatprep.subr.bf16.mxu0 %v2688_v16  ;;  %v2713_v16 = vld [vmem:[#allocation3 + $0x228] ss:$16 sps:$4 sm:$0xff]  }
  0x68   : > { %609 = vmatprep.mubr.bf16.mxu1 %v2843_v0  ;;  %1757 = vmatpush1.bf16.msra.mxu1 %v2683_v17  ;;  %v2706_v0 = vld [vmem:[#allocation3 + $0x204] ss:$16 sps:$4 sm:$0xff]  }
  0x69   : > { %1758 = vmatprep.subr.bf16.mxu1 %v2691_v20  ;;  %v2718_v17 = vld [vmem:[#allocation3 + $0x244] ss:$16 sps:$4 sm:$0xff]  }
  0x6a   : > { %1533 = vmatpush1.bf16.msra.mxu0 %v2686_v19 }
  0x6b   : > { %1534 = vmatprep.subr.bf16.mxu0 %v2694_v22 }
  0x6c   : > { %1759 = vmatpush1.bf16.msra.mxu1 %v2689_v21  ;;  %v2721_v21 = vld [vmem:[#allocation3 + $0x24c] ss:$16 sps:$4 sm:$0xff]  }
  0x6d   : > { %2313 = vmatmul.mubr.msk.bf16.gmra.mrb[28].mxu0 %vm369_vm0, %v322_v18  ;;  %1760 = vmatprep.subr.bf16.mxu1 %v2697_v23 }
  0x6e   : > { %1535 = vmatpush1.bf16.msra.mxu0 %v2692_v24 }
  0x6f   : > { %2321 = vmatmul.mubr.msk.bf16.gmra.mrb[28].mxu1 %vm369_vm0, %v322_v18  ;;  %1536 = vmatprep.subr.bf16.mxu0 %v2700_v26 }
  0x70   : > { %1761 = vmatpush1.bf16.msra.mxu1 %v2695_v25 }
  0x71   : > { %1762 = vmatprep.subr.bf16.mxu1 %v2703_v27 }
  0x72   : > { %1537 = vmatpush1.bf16.msra.mxu0 %v2698_v28 }
  0x73   : > { %1619 = vmatprep.subr.bf16.mxu0 %v2706_v0 }
  0x74   : > { %1763 = vmatpush1.bf16.msra.mxu1 %v2701_v29 }
  0x75   : > { %1845 = vmatprep.subr.bf16.mxu1 %v2709_v30  ;;  %v2716_v30 = vld [vmem:[#allocation3 + $0x240] ss:$16 sps:$4 sm:$0xff]  }
 0x108   : > { %v428_v38 = vpop.f32.mrb[0].mxu0  ;;  %v541_v55 = vpop.f32.mrb[0].mxu1 }
 0x109   : > { %v429_v40 = vadd.f32 %v428_v38, %v3015_v36  ;;  %v430_v41 = vpop.f32.mrb[1].mxu0  ;;  %v542_v60 = vadd.f32 %v541_v55, %v3029_v48  ;;  %v543_v61 = vpop.f32.mrb[1].mxu1  ;;  %v2722_v55 = vld [vmem:[#allocation3 + $0x260] ss:$16 sps:$4 sm:$0xff]  }
 0x10a   : > { %v431_v43 = vadd.f32 %v430_v41, %v3018_v37  ;;  %v432_v44 = vpop.f32.mrb[2].mxu0  ;;  %v544_v3 = vadd.f32 %v543_v61, %v3032_v51  ;;  %v545_v4 = vpop.f32.mrb[2].mxu1  ;;  %v2724_v41 = vld [vmem:[#allocation3 + $0x264] ss:$16 sps:$4 sm:$0xff]  }
 0x10b   : > { %v433_v45 = vadd.f32 %v432_v44, %v3015_v36  ;;  %v434_v46 = vpop.f32.mrb[3].mxu0  ;;  %v620_v49 = vmax.f32 %v429_v40, 0.0  ;;  %v622_v7 = vmax.f32 %v542_v60, 0.0  ;;  %v546_v8 = vadd.f32 %v545_v4, %v3029_v48  ;;  %v547_v9 = vpop.f32.mrb[3].mxu1  ;;  %v2730_v60 = vld [vmem:[#allocation3 + $0x284] ss:$16 sps:$4 sm:$0xff]  }
 0x10c   : > { %v435_v47 = vadd.f32 %v434_v46, %v3018_v37  ;;  %v621_v52 = vmax.f32 %v431_v43, 0.0  ;;  %v623_v13 = vmax.f32 %v544_v3, 0.0  ;;  %v548_v14 = vadd.f32 %v547_v9, %v3032_v51  ;;  %v2727_v43 = vld [vmem:[#allocation3 + $0x26c] ss:$16 sps:$4 sm:$0xff]  }
 0x10d   : > { %v624_v50 = vmax.f32 %v433_v45, 0.0  ;;  %v626_v18 = vmax.f32 %v546_v8, 0.0 }
 0x10e   : > { %v625_v53 = vmax.f32 %v435_v47, 0.0  ;;  %v627_v22 = vmax.f32 %v548_v14, 0.0 }
 0x10f   : > { %v684_v54 = vpack.c.bf16 %v624_v50, %v620_v49  ;;  %v3042_v25 = vpack.c.bf16 %v626_v18, %v622_v7  ;;  %v2739_v18 = vld [vmem:[#allocation3 + $0x2ac] ss:$16 sps:$4 sm:$0xff]  }
 0x110   : > { %v685_v56 = vpack.c.bf16 %v625_v53, %v621_v52  ;;  %v438_v57 = vpop.f32.mrb[4].mxu0  ;;  %v3044_v27 = vpack.c.bf16 %v627_v22, %v623_v13 }
 0x111   : > { %v439_v62 = vadd.f32 %v438_v57, %v3015_v36  ;;  %v440_v63 = vpop.f32.mrb[5].mxu0 }
 0x112   : > { %v441_v5 = vadd.f32 %v440_v63, %v3018_v37  ;;  %v442_v6 = vpop.f32.mrb[6].mxu0  ;;  %1538 = vmatprep.mubr.bf16.mxu0 %v685_v56  ;;  %1764 = vmatprep.mubr.bf16.mxu1 %v685_v56  ;;  %v551_v28 = vpop.f32.mrb[4].mxu1 }
 0x113   : > { %v443_v10 = vadd.f32 %v442_v6, %v3015_v36  ;;  %v444_v11 = vpop.f32.mrb[7].mxu0  ;;  %1539 = vmatmul.mubr.bf16.vlgmr.msra.gmra.mrb[32].mxu0 %v684_v54  ;;  %1765 = vmatmul.mubr.bf16.vlgmr.msra.gmra.mrb[32].mxu1 %v684_v54  ;;  %v628_v19 = vmax.f32 %v439_v62, 0.0  ;;  %v552_v32 = vadd.f32 %v551_v28, %v3029_v48  ;;  %v553_v34 = vpop.f32.mrb[5].mxu1 }
 0x114   : > { %v445_v15 = vadd.f32 %v444_v11, %v3018_v37  ;;  %1620 = vmatpush1.bf16.msra.mxu0 %v2704_v58  ;;  %1846 = vmatpush1.bf16.msra.mxu1 %v2707_v59  ;;  %v629_v23 = vmax.f32 %v441_v5, 0.0  ;;  %v554_v44 = vadd.f32 %v553_v34, %v3032_v51  ;;  %v555_v45 = vpop.f32.mrb[6].mxu1  ;;  %v2725_v59 = vld [vmem:[#allocation3 + $0x268] ss:$16 sps:$4 sm:$0xff]   ;;  %v2728_v11 = vld [vmem:[#allocation3 + $0x280] ss:$16 sps:$4 sm:$0xff]  }
 0x115   : > { %v632_v20 = vmax.f32 %v443_v10, 0.0  ;;  %1621 = vmatprep.subr.bf16.mxu0 %v2712_v1  ;;  %1847 = vmatprep.subr.bf16.mxu1 %v2715_v2  ;;  %v630_v49 = vmax.f32 %v552_v32, 0.0  ;;  %v556_v50 = vadd.f32 %v555_v45, %v3029_v48  ;;  %v557_v52 = vpop.f32.mrb[7].mxu1  ;;  %v2733_v1 = vld [vmem:[#allocation3 + $0x28c] ss:$16 sps:$4 sm:$0xff]  }
 0x116   : > { %v633_v24 = vmax.f32 %v445_v15, 0.0  ;;  %v631_v56 = vmax.f32 %v554_v44, 0.0  ;;  %v558_v57 = vadd.f32 %v557_v52, %v3032_v51  ;;  %v2737_v34 = vld [vmem:[#allocation3 + $0x2a8] ss:$16 sps:$4 sm:$0xff]   ;;  %v2745_v44 = vld [vmem:[#allocation3 + $0x2cc] ss:$16 sps:$4 sm:$0xff]  }
 0x117   : > { %v688_v26 = vpack.c.bf16 %v632_v20, %v628_v19  ;;  %v634_v61 = vmax.f32 %v556_v50, 0.0 }
 0x118   : > { %v689_v29 = vpack.c.bf16 %v633_v24, %v629_v23  ;;  %1622 = vmatpush1.bf16.msra.mxu0 %v2710_v12  ;;  %v448_v0 = vpop.f32.mrb[8].mxu0  ;;  %1848 = vmatpush1.bf16.msra.mxu1 %v2713_v16  ;;  %v635_v2 = vmax.f32 %v558_v57, 0.0  ;;  %v2731_v12 = vld [vmem:[#allocation3 + $0x288] ss:$16 sps:$4 sm:$0xff]  }
 0x119   : > { %v449_v38 = vadd.f32 %v448_v0, %v3015_v36  ;;  %v450_v40 = vpop.f32.mrb[9].mxu0  ;;  %1623 = vmatprep.subr.bf16.mxu0 %v2718_v17  ;;  %1849 = vmatprep.subr.bf16.mxu1 %v2721_v21  ;;  %v3054_v5 = vpack.c.bf16 %v634_v61, %v630_v49  ;;  %v2736_v17 = vld [vmem:[#allocation3 + $0x2a4] ss:$16 sps:$4 sm:$0xff]   ;;  %v2734_v0 = vld [vmem:[#allocation3 + $0x2a0] ss:$16 sps:$4 sm:$0xff]  }
 0x11a   : > { %v451_v46 = vadd.f32 %v450_v40, %v3018_v37  ;;  %v452_v47 = vpop.f32.mrb[10].mxu0  ;;  %1548 = vmatprep.mubr.bf16.mxu0 %v689_v29  ;;  %1774 = vmatprep.mubr.bf16.mxu1 %v689_v29  ;;  %v3056_v7 = vpack.c.bf16 %v635_v2, %v631_v56  ;;  %v561_v8 = vpop.f32.mrb[8].mxu1  ;;  %v2740_v56 = vld [vmem:[#allocation3 + $0x2c0] ss:$16 sps:$4 sm:$0xff]   ;;  %v2743_v57 = vld [vmem:[#allocation3 + $0x2c8] ss:$16 sps:$4 sm:$0xff]  }
 0x11b   : > { %v453_v53 = vadd.f32 %v452_v47, %v3015_v36  ;;  %v454_v54 = vpop.f32.mrb[11].mxu0  ;;  %1549 = vmatmul.mubr.bf16.gmra.mrb[36].mxu0 %v688_v26  ;;  %1775 = vmatmul.mubr.bf16.gmra.mrb[36].mxu1 %v688_v26  ;;  %v636_v62 = vmax.f32 %v449_v38, 0.0  ;;  %v562_v13 = vadd.f32 %v561_v8, %v3029_v48  ;;  %v563_v14 = vpop.f32.mrb[9].mxu1  ;;  %v2742_v38 = vld [vmem:[#allocation3 + $0x2c4] ss:$16 sps:$4 sm:$0xff]  }
 0x11c   : > { %v455_v58 = vadd.f32 %v454_v54, %v3018_v37  ;;  %1624 = vmatpush1.bf16.msra.mxu0 %v2716_v30  ;;  %1850 = vmatpush1.bf16.msra.mxu1 %v2719_v31  ;;  %v637_v3 = vmax.f32 %v451_v46, 0.0  ;;  %v564_v19 = vadd.f32 %v563_v14, %v3032_v51  ;;  %v565_v20 = vpop.f32.mrb[10].mxu1 }
 0x11d   : > { %v640_v63 = vmax.f32 %v453_v53, 0.0  ;;  %1625 = vmatprep.subr.bf16.mxu0 %v2724_v41  ;;  %1851 = vmatprep.subr.bf16.mxu1 %v2727_v43  ;;  %v638_v23 = vmax.f32 %v562_v13, 0.0  ;;  %v566_v24 = vadd.f32 %v565_v20, %v3029_v48  ;;  %v567_v26 = vpop.f32.mrb[11].mxu1 }
 0x11e   : > { %v641_v4 = vmax.f32 %v455_v58, 0.0  ;;  %v639_v30 = vmax.f32 %v564_v19, 0.0  ;;  %v568_v31 = vadd.f32 %v567_v26, %v3032_v51 }
 0x11f   : > { %v692_v6 = vpack.c.bf16 %v640_v63, %v636_v62  ;;  %v642_v40 = vmax.f32 %v566_v24, 0.0  ;;  %v2748_v62 = vld [vmem:[#allocation3 + $0x2e4] ss:$16 sps:$4 sm:$0xff]   ;;  %v2751_v63 = vld [vmem:[#allocation3 + $0x2ec] ss:$16 sps:$4 sm:$0xff]  }
 0x120   : > { %v693_v9 = vpack.c.bf16 %v641_v4, %v637_v3  ;;  %1626 = vmatpush1.bf16.msra.mxu0 %v2722_v55  ;;  %v458_v10 = vpop.f32.mrb[12].mxu0  ;;  %1852 = vmatpush1.bf16.msra.mxu1 %v2725_v59  ;;  %v643_v45 = vmax.f32 %v568_v31, 0.0 }
 0x121   : > { %v459_v15 = vadd.f32 %v458_v10, %v3015_v36  ;;  %v460_v16 = vpop.f32.mrb[13].mxu0  ;;  %1627 = vmatprep.subr.bf16.mxu0 %v2730_v60  ;;  %1853 = vmatprep.subr.bf16.mxu1 %v2733_v1  ;;  %v3066_v49 = vpack.c.bf16 %v642_v40, %v638_v23 }
 0x122   : > { %v461_v21 = vadd.f32 %v460_v16, %v3018_v37  ;;  %v462_v22 = vpop.f32.mrb[14].mxu0  ;;  %1558 = vmatprep.mubr.bf16.mxu0 %v693_v9  ;;  %1784 = vmatprep.mubr.bf16.mxu1 %v693_v9  ;;  %v3068_v52 = vpack.c.bf16 %v643_v45, %v639_v30  ;;  %v571_v53 = vpop.f32.mrb[12].mxu1  ;;  %v2749_v16 = vld [vmem:[#allocation3 + $0x2e8] ss:$16 sps:$4 sm:$0xff]   ;;  %v2763_v45 = vld [vmem:[#allocation3 + $0x32c] ss:$16 sps:$4 sm:$0xff]  }
 0x123   : > { %v463_v28 = vadd.f32 %v462_v22, %v3015_v36  ;;  %v464_v29 = vpop.f32.mrb[15].mxu0  ;;  %1559 = vmatmul.mubr.bf16.gmra.mrb[40].mxu0 %v692_v6  ;;  %1785 = vmatmul.mubr.bf16.gmra.mrb[40].mxu1 %v692_v6  ;;  %v644_v41 = vmax.f32 %v459_v15, 0.0  ;;  %v572_v58 = vadd.f32 %v571_v53, %v3029_v48  ;;  %v573_v59 = vpop.f32.mrb[13].mxu1 }
 0x124   : > { %v465_v32 = vadd.f32 %v464_v29, %v3018_v37  ;;  %1628 = vmatpush1.bf16.msra.mxu0 %v2728_v11  ;;  %1854 = vmatpush1.bf16.msra.mxu1 %v2731_v12  ;;  %v645_v46 = vmax.f32 %v461_v21, 0.0  ;;  %v574_v1 = vadd.f32 %v573_v59, %v3032_v51  ;;  %v575_v2 = vpop.f32.mrb[14].mxu1  ;;  %v2746_v12 = vld [vmem:[#allocation3 + $0x2e0] ss:$16 sps:$4 sm:$0xff]   ;;  %v2757_v21 = vld [vmem:[#allocation3 + $0x30c] ss:$16 sps:$4 sm:$0xff]  }
 0x125   : > { %v648_v43 = vmax.f32 %v463_v28, 0.0  ;;  %1629 = vmatprep.subr.bf16.mxu0 %v2736_v17  ;;  %1855 = vmatprep.subr.bf16.mxu1 %v2739_v18  ;;  %v646_v6 = vmax.f32 %v572_v58, 0.0  ;;  %v576_v8 = vadd.f32 %v575_v2, %v3029_v48  ;;  %v577_v9 = vpop.f32.mrb[15].mxu1  ;;  %v2754_v17 = vld [vmem:[#allocation3 + $0x304] ss:$16 sps:$4 sm:$0xff]  }
 0x126   : > { %v649_v47 = vmax.f32 %v465_v32, 0.0  ;;  %v647_v13 = vmax.f32 %v574_v1, 0.0  ;;  %v578_v14 = vadd.f32 %v577_v9, %v3032_v51  ;;  %v2752_v32 = vld [vmem:[#allocation3 + $0x300] ss:$16 sps:$4 sm:$0xff]   ;;  %v2766_v1 = vld [vmem:[#allocation3 + $0x344] ss:$16 sps:$4 sm:$0xff]  }
 0x127   : > { %v696_v50 = vpack.c.bf16 %v648_v43, %v644_v41  ;;  %v650_v18 = vmax.f32 %v576_v8, 0.0  ;;  %v2758_v59 = vld [vmem:[#allocation3 + $0x320] ss:$16 sps:$4 sm:$0xff]  }
 0x128   : > { %v697_v54 = vpack.c.bf16 %v649_v47, %v645_v46  ;;  %1630 = vmatpush1.bf16.msra.mxu0 %v2734_v0  ;;  %v468_v55 = vpop.f32.mrb[16].mxu0  ;;  %1856 = vmatpush1.bf16.msra.mxu1 %v2737_v34  ;;  %v651_v22 = vmax.f32 %v578_v14, 0.0  ;;  %v2755_v34 = vld [vmem:[#allocation3 + $0x308] ss:$16 sps:$4 sm:$0xff]  }
 0x129   : > { %v469_v60 = vadd.f32 %v468_v55, %v3015_v36  ;;  %v470_v61 = vpop.f32.mrb[17].mxu0  ;;  %1631 = vmatprep.subr.bf16.mxu0 %v2742_v38  ;;  %1857 = vmatprep.subr.bf16.mxu1 %v2745_v44  ;;  %v3078_v26 = vpack.c.bf16 %v650_v18, %v646_v6  ;;  %v2760_v44 = vld [vmem:[#allocation3 + $0x324] ss:$16 sps:$4 sm:$0xff]   ;;  %v2769_v6 = vld [vmem:[#allocation3 + $0x34c] ss:$16 sps:$4 sm:$0xff]  }
 0x12a   : > { %v471_v3 = vadd.f32 %v470_v61, %v3018_v37  ;;  %v472_v4 = vpop.f32.mrb[18].mxu0  ;;  %1568 = vmatprep.mubr.bf16.mxu0 %v697_v54  ;;  %1794 = vmatprep.mubr.bf16.mxu1 %v697_v54  ;;  %v3080_v29 = vpack.c.bf16 %v651_v22, %v647_v13  ;;  %v581_v0 = vpop.f32.mrb[16].mxu1  ;;  %v2767_v18 = vld [vmem:[#allocation3 + $0x348] ss:$16 sps:$4 sm:$0xff]  }
 0x12b   : > { %v473_v10 = vadd.f32 %v472_v4, %v3015_v36  ;;  %v474_v11 = vpop.f32.mrb[19].mxu0  ;;  %1569 = vmatmul.mubr.bf16.gmra.mrb[44].mxu0 %v696_v50  ;;  %1795 = vmatmul.mubr.bf16.gmra.mrb[44].mxu1 %v696_v50  ;;  %v652_v19 = vmax.f32 %v469_v60, 0.0  ;;  %v582_v38 = vadd.f32 %v581_v0, %v3029_v48  ;;  %v583_v40 = vpop.f32.mrb[17].mxu1 }
 0x12c   : > { %v475_v15 = vadd.f32 %v474_v11, %v3018_v37  ;;  %1632 = vmatpush1.bf16.msra.mxu0 %v2740_v56  ;;  %1858 = vmatpush1.bf16.msra.mxu1 %v2743_v57  ;;  %v653_v23 = vmax.f32 %v471_v3, 0.0  ;;  %v584_v46 = vadd.f32 %v583_v40, %v3032_v51  ;;  %v585_v47 = vpop.f32.mrb[18].mxu1 }
 0x12d   : > { %v656_v20 = vmax.f32 %v473_v10, 0.0  ;;  %1633 = vmatprep.subr.bf16.mxu0 %v2748_v62  ;;  %1859 = vmatprep.subr.bf16.mxu1 %v2751_v63  ;;  %v654_v54 = vmax.f32 %v582_v38, 0.0  ;;  %v586_v55 = vadd.f32 %v585_v47, %v3029_v48  ;;  %v587_v56 = vpop.f32.mrb[19].mxu1  ;;  %v2761_v63 = vld [vmem:[#allocation3 + $0x328] ss:$16 sps:$4 sm:$0xff]  }
 0x12e   : > { %v657_v24 = vmax.f32 %v475_v15, 0.0  ;;  %v655_v60 = vmax.f32 %v584_v46, 0.0  ;;  %v588_v61 = vadd.f32 %v587_v56, %v3032_v51  ;;  %v2773_v47 = vld [vmem:[#allocation3 + $0x368] ss:$16 sps:$4 sm:$0xff]   ;;  %v2781_v56 = vld [vmem:[#allocation3 + $0x38c] ss:$16 sps:$4 sm:$0xff]  }
 0x12f   : > { %v700_v28 = vpack.c.bf16 %v656_v20, %v652_v19  ;;  %v658_v2 = vmax.f32 %v586_v55, 0.0 }
 0x130   : > { %v701_v30 = vpack.c.bf16 %v657_v24, %v653_v23  ;;  %1634 = vmatpush1.bf16.msra.mxu0 %v2746_v12  ;;  %v478_v31 = vpop.f32.mrb[20].mxu0  ;;  %1860 = vmatpush1.bf16.msra.mxu1 %v2749_v16  ;;  %v659_v8 = vmax.f32 %v588_v61, 0.0  ;;  %v2772_v23 = vld [vmem:[#allocation3 + $0x364] ss:$16 sps:$4 sm:$0xff]   ;;  %v2775_v24 = vld [vmem:[#allocation3 + $0x36c] ss:$16 sps:$4 sm:$0xff]  }
 0x131   : > { %v479_v41 = vadd.f32 %v478_v31, %v3015_v36  ;;  %v480_v43 = vpop.f32.mrb[21].mxu0  ;;  %1635 = vmatprep.subr.bf16.mxu0 %v2754_v17  ;;  %1861 = vmatprep.subr.bf16.mxu1 %v2757_v21  ;;  %v3090_v11 = vpack.c.bf16 %v658_v2, %v654_v54  ;;  %v2764_v17 = vld [vmem:[#allocation3 + $0x340] ss:$16 sps:$4 sm:$0xff]  }
 0x132   : > { %v481_v50 = vadd.f32 %v480_v43, %v3018_v37  ;;  %v482_v53 = vpop.f32.mrb[22].mxu0  ;;  %1578 = vmatprep.mubr.bf16.mxu0 %v701_v30  ;;  %1804 = vmatprep.mubr.bf16.mxu1 %v701_v30  ;;  %v3092_v13 = vpack.c.bf16 %v659_v8, %v655_v60  ;;  %v591_v14 = vpop.f32.mrb[20].mxu1  ;;  %v2770_v43 = vld [vmem:[#allocation3 + $0x360] ss:$16 sps:$4 sm:$0xff]  }
 0x133   : > { %v483_v57 = vadd.f32 %v482_v53, %v3015_v36  ;;  %v484_v58 = vpop.f32.mrb[23].mxu0  ;;  %1579 = vmatmul.mubr.bf16.gmra.mrb[48].mxu0 %v700_v28  ;;  %1805 = vmatmul.mubr.bf16.gmra.mrb[48].mxu1 %v700_v28  ;;  %v660_v3 = vmax.f32 %v479_v41, 0.0  ;;  %v592_v19 = vadd.f32 %v591_v14, %v3029_v48  ;;  %v593_v20 = vpop.f32.mrb[21].mxu1  ;;  %v2787_v14 = vld [vmem:[#allocation3 + $0x3ac] ss:$16 sps:$4 sm:$0xff]  }
 0x134   : > { %v485_v62 = vadd.f32 %v484_v58, %v3018_v37  ;;  %1636 = vmatpush1.bf16.msra.mxu0 %v2752_v32  ;;  %1862 = vmatpush1.bf16.msra.mxu1 %v2755_v34  ;;  %v661_v9 = vmax.f32 %v481_v50, 0.0  ;;  %v594_v28 = vadd.f32 %v593_v20, %v3032_v51  ;;  %v595_v0 = vpop.f32.mrb[22].mxu1  ;;  %v2778_v50 = vld [vmem:[#allocation3 + $0x384] ss:$16 sps:$4 sm:$0xff]  }
 0x135   : > { %v664_v4 = vmax.f32 %v483_v57, 0.0  ;;  %1637 = vmatprep.subr.bf16.mxu0 %v2760_v44  ;;  %1863 = vmatprep.subr.bf16.mxu1 %v2763_v45  ;;  %v662_v32 = vmax.f32 %v592_v19, 0.0  ;;  %v596_v34 = vadd.f32 %v595_v0, %v3029_v48  ;;  %v597_v38 = vpop.f32.mrb[23].mxu1 }
 0x136   : > { %v665_v10 = vmax.f32 %v485_v62, 0.0  ;;  %v663_v44 = vmax.f32 %v594_v28, 0.0  ;;  %v598_v45 = vadd.f32 %v597_v38, %v3032_v51 }
 0x137   : > { %v704_v12 = vpack.c.bf16 %v664_v4, %v660_v3  ;;  %v666_v53 = vmax.f32 %v596_v34, 0.0  ;;  %v2776_v3 = vld [vmem:[#allocation3 + $0x380] ss:$16 sps:$4 sm:$0xff]   ;;  %v2779_v4 = vld [vmem:[#allocation3 + $0x388] ss:$16 sps:$4 sm:$0xff]  }
 0x138   : > { %v705_v15 = vpack.c.bf16 %v665_v10, %v661_v9  ;;  %1638 = vmatpush1.bf16.msra.mxu0 %v2758_v59  ;;  %v488_v16 = vpop.f32.mrb[24].mxu0  ;;  %1864 = vmatpush1.bf16.msra.mxu1 %v2761_v63  ;;  %v667_v57 = vmax.f32 %v598_v45, 0.0 }
 0x139   : > { %v489_v21 = vadd.f32 %v488_v16, %v3015_v36  ;;  %v490_v22 = vpop.f32.mrb[25].mxu0  ;;  %1639 = vmatprep.subr.bf16.mxu0 %v2766_v1  ;;  %1865 = vmatprep.subr.bf16.mxu1 %v2769_v6  ;;  %v3102_v60 = vpack.c.bf16 %v666_v53, %v662_v32  ;;  %v2790_v32 = vld [vmem:[#allocation3 + $0x3c4] ss:$16 sps:$4 sm:$0xff]  }
 0x13a   : > { %v491_v30 = vadd.f32 %v490_v22, %v3018_v37  ;;  %v492_v31 = vpop.f32.mrb[26].mxu0  ;;  %1588 = vmatprep.mubr.bf16.mxu0 %v705_v15  ;;  %1814 = vmatprep.mubr.bf16.mxu1 %v705_v15  ;;  %v3104_v62 = vpack.c.bf16 %v667_v57, %v663_v44  ;;  %v601_v63 = vpop.f32.mrb[24].mxu1  ;;  %v2796_v57 = vld [vmem:[#allocation3 + $0x3e4] ss:$16 sps:$4 sm:$0xff]  }
 0x13b   : > { %v493_v40 = vadd.f32 %v492_v31, %v3015_v36  ;;  %v494_v41 = vpop.f32.mrb[27].mxu0  ;;  %1589 = vmatmul.mubr.bf16.gmra.mrb[52].mxu0 %v704_v12  ;;  %1815 = vmatmul.mubr.bf16.gmra.mrb[52].mxu1 %v704_v12  ;;  %v668_v54 = vmax.f32 %v489_v21, 0.0  ;;  %v602_v6 = vadd.f32 %v601_v63, %v3029_v48  ;;  %v603_v8 = vpop.f32.mrb[25].mxu1  ;;  %v2784_v12 = vld [vmem:[#allocation3 + $0x3a4] ss:$16 sps:$4 sm:$0xff]  }
 0x13c   : > { %v495_v46 = vadd.f32 %v494_v41, %v3018_v37  ;;  %1640 = vmatpush1.bf16.msra.mxu0 %v2764_v17  ;;  %1866 = vmatpush1.bf16.msra.mxu1 %v2767_v18  ;;  %v669_v58 = vmax.f32 %v491_v30, 0.0  ;;  %v604_v15 = vadd.f32 %v603_v8, %v3032_v51  ;;  %v605_v16 = vpop.f32.mrb[26].mxu1  ;;  %v2785_v31 = vld [vmem:[#allocation3 + $0x3a8] ss:$16 sps:$4 sm:$0xff]   ;;  %v2793_v41 = vld [vmem:[#allocation3 + $0x3cc] ss:$16 sps:$4 sm:$0xff]  }
 0x13d   : > { %v672_v55 = vmax.f32 %v493_v40, 0.0  ;;  %1641 = vmatprep.subr.bf16.mxu0 %v2772_v23  ;;  %1867 = vmatprep.subr.bf16.mxu1 %v2775_v24  ;;  %v670_v19 = vmax.f32 %v602_v6, 0.0  ;;  %v606_v20 = vadd.f32 %v605_v16, %v3029_v48  ;;  %v607_v21 = vpop.f32.mrb[27].mxu1  ;;  %v2782_v24 = vld [vmem:[#allocation3 + $0x3a0] ss:$16 sps:$4 sm:$0xff]  }
 0x13e   : > { %v673_v59 = vmax.f32 %v495_v46, 0.0  ;;  %v671_v28 = vmax.f32 %v604_v15, 0.0  ;;  %v608_v0 = vadd.f32 %v607_v21, %v3032_v51  ;;  %v2794_v6 = vld [vmem:[#allocation3 + $0x3e0] ss:$16 sps:$4 sm:$0xff]   ;;  %v2797_v8 = vld [vmem:[#allocation3 + $0x3e8] ss:$16 sps:$4 sm:$0xff]  }
 0x13f   : > { %v708_v61 = vpack.c.bf16 %v672_v55, %v668_v54  ;;  %v674_v34 = vmax.f32 %v606_v20, 0.0  ;;  %v2791_v54 = vld [vmem:[#allocation3 + $0x3c8] ss:$16 sps:$4 sm:$0xff]  }
 0x140   : > { %v709_v1 = vpack.c.bf16 %v673_v59, %v669_v58  ;;  %1642 = vmatpush1.bf16.msra.mxu0 %v2770_v43  ;;  %v498_v2 = vpop.f32.mrb[28].mxu0  ;;  %1868 = vmatpush1.bf16.msra.mxu1 %v2773_v47 }
 0x141   : > { %v499_v9 = vadd.f32 %v498_v2, %v3015_v36  ;;  %v500_v10 = vpop.f32.mrb[29].mxu0  ;;  %1643 = vmatprep.subr.bf16.mxu0 %v2778_v50  ;;  %1869 = vmatprep.subr.bf16.mxu1 %v2781_v56  ;;  %v3114_v45 = vpack.c.bf16 %v674_v34, %v670_v19 }
 0x142   : > { %v501_v17 = vadd.f32 %v500_v10, %v3018_v37  ;;  %v502_v18 = vpop.f32.mrb[30].mxu0  ;;  %1598 = vmatprep.mubr.bf16.mxu0 %v709_v1  ;;  %1824 = vmatprep.mubr.bf16.mxu1 %v709_v1  ;;  %v611_v50 = vpop.f32.mrb[28].mxu1 }
 0x143   : > { %v503_v22 = vadd.f32 %v502_v18, %v3015_v36  ;;  %v504_v23 = vpop.f32.mrb[31].mxu0  ;;  %1599 = vmatmul.mubr.bf16.gmra.mrb[56].mxu0 %v708_v61  ;;  %1825 = vmatmul.mubr.bf16.gmra.mrb[56].mxu1 %v708_v61  ;;  %v676_v38 = vmax.f32 %v499_v9, 0.0  ;;  %v675_v36 = vmax.f32 %v608_v0, 0.0  ;;  %v612_v55 = vadd.f32 %v611_v50, %v3029_v48  ;;  %v613_v56 = vpop.f32.mrb[29].mxu1  ;;  %v2799_v61 = vld [vmem:[#allocation3 + $0x3ec] ss:$16 sps:$4 sm:$0xff]  }
 0x144   : > { %v505_v30 = vadd.f32 %v504_v23, %v3018_v37  ;;  %1644 = vmatpush1.bf16.msra.mxu0 %v2776_v3  ;;  %1870 = vmatpush1.bf16.msra.mxu1 %v2779_v4  ;;  %v677_v43 = vmax.f32 %v501_v17, 0.0  ;;  %v2788_v37 = vld [vmem:[#allocation3 + $0x3c0] ss:$16 sps:$4 sm:$0xff]   ;;  %v614_v58 = vadd.f32 %v613_v56, %v3032_v51  ;;  %v615_v59 = vpop.f32.mrb[30].mxu1 }
 0x145   : > { %v680_v40 = vmax.f32 %v503_v22, 0.0  ;;  %1645 = vmatprep.subr.bf16.mxu0 %v2784_v12  ;;  %1871 = vmatprep.subr.bf16.mxu1 %v2787_v14  ;;  %v711_v47 = vpack.c.bf16 %v675_v36, %v671_v28  ;;  %v678_v63 = vmax.f32 %v612_v55, 0.0  ;;  %v616_v1 = vadd.f32 %v615_v59, %v3029_v48  ;;  %v617_v2 = vpop.f32.mrb[31].mxu1 }
 0x146   : > { %v681_v44 = vmax.f32 %v505_v30, 0.0  ;;  %v679_v3 = vmax.f32 %v614_v58, 0.0  ;;  %v618_v4 = vadd.f32 %v617_v2, %v3032_v51  ;;  %v844_v51 = vld [vmem:[%s3350_s4] sm:$0xf] }
 0x147   : > { %v712_v46 = vpack.c.bf16 %v680_v40, %v676_v38  ;;  %v682_v9 = vmax.f32 %v616_v1, 0.0 }
 0x148   : > { %v713_v53 = vpack.c.bf16 %v681_v44, %v677_v43  ;;  %1646 = vmatpush1.bf16.msra.mxu0 %v2782_v24  ;;  %1872 = vmatpush1.bf16.msra.mxu1 %v2785_v31  ;;  %v683_v10 = vmax.f32 %v618_v4, 0.0 }
 0x149   : > { %1647 = vmatprep.subr.bf16.mxu0 %v2790_v32  ;;  %1873 = vmatprep.subr.bf16.mxu1 %v2793_v41  ;;  %v714_v12 = vpack.c.bf16 %v682_v9, %v678_v63 }
 0x14a   : > { %1608 = vmatprep.mubr.bf16.mxu0 %v713_v53  ;;  %1834 = vmatprep.mubr.bf16.mxu1 %v713_v53  ;;  %v715_v48 = vpack.c.bf16 %v683_v10, %v679_v3 }
 0x14b   : > { %1609 = vmatmul.mubr.bf16.gmra.mrb[60].mxu0 %v712_v46  ;;  %1835 = vmatmul.mubr.bf16.gmra.mrb[60].mxu1 %v712_v46 }
 0x14c   : > { %1648 = vmatpush1.bf16.msra.mxu0 %v2788_v37  ;;  %1874 = vmatpush1.bf16.msra.mxu1 %v2791_v54 }
 0x14d   : > { %1649 = vmatprep.subr.bf16.mxu0 %v2796_v57  ;;  %1651 = vmatprep.mubr.bf16.mxu0 %v3044_v27 }
 0x14e   : > { %1875 = vmatprep.subr.bf16.mxu1 %v2799_v61  ;;  %1877 = vmatprep.mubr.bf16.mxu1 %v3044_v27  ;;  %v3153_v27 = vrot.slane %v844_v51, %v3020_v39 }
 0x150   : > { %1650 = vmatpush1.bf16.msra.mxu0 %v2794_v6  ;;  %1876 = vmatpush1.bf16.msra.mxu1 %v2797_v8 }
 0x153   : > { %1652 = vmatmul.mubr.bf16.vlgmr.msra.gmra.mrb[32].mxu0 %v3042_v25  ;;  %1878 = vmatmul.mubr.bf16.vlgmr.msra.gmra.mrb[32].mxu1 %v3042_v25  ;;  %v3150_v25 = vrot.slane %v844_v51, %v3007_v33 }
 0x154   : > { %1661 = vmatprep.mubr.bf16.mxu0 %v3056_v7  ;;  %1887 = vmatprep.mubr.bf16.mxu1 %v3056_v7  ;;  %v3159_v7 = vrot.slane %v844_v51, %v3012_v35 }
 0x15b   : > { %1662 = vmatmul.mubr.bf16.gmra.mrb[36].mxu0 %v3054_v5  ;;  %1888 = vmatmul.mubr.bf16.gmra.mrb[36].mxu1 %v3054_v5  ;;  %v2022_v5 = vld [vmem:[%s3351_s5] sm:$0xf] }
 0x15c   : > { %1671 = vmatprep.mubr.bf16.mxu0 %v3068_v52  ;;  %1897 = vmatprep.mubr.bf16.mxu1 %v3068_v52  ;;  %v3171_v15 = vrot.slane %v2022_v5, %v3012_v35  ;;  %v3174_v19 = vrot.slane %v2022_v5, %v3020_v39  ;;  %v3185_v38 = vrot.slane %v2022_v5, %v3023_v42 }
 0x163   : > { %1672 = vmatmul.mubr.bf16.gmra.mrb[40].mxu0 %v3066_v49  ;;  %1898 = vmatmul.mubr.bf16.gmra.mrb[40].mxu1 %v3066_v49 }
 0x164   : > { %1681 = vmatprep.mubr.bf16.mxu0 %v3080_v29  ;;  %1907 = vmatprep.mubr.bf16.mxu1 %v3080_v29 }
 0x16b   : > { %1682 = vmatmul.mubr.bf16.gmra.mrb[44].mxu0 %v3078_v26  ;;  %1908 = vmatmul.mubr.bf16.gmra.mrb[44].mxu1 %v3078_v26  ;;  %v3162_v26 = vrot.slane %v844_v51, %v3023_v42 }
 0x16c   : > { %1691 = vmatprep.mubr.bf16.mxu0 %v3092_v13  ;;  %1917 = vmatprep.mubr.bf16.mxu1 %v3092_v13 }
 0x173   : > { %1692 = vmatmul.mubr.bf16.gmra.mrb[48].mxu0 %v3090_v11  ;;  %1918 = vmatmul.mubr.bf16.gmra.mrb[48].mxu1 %v3090_v11  ;;  %v3166_v11 = vrot.slane %v2022_v5, %v3007_v33 }
 0x174   : > { %1701 = vmatprep.mubr.bf16.mxu0 %v3104_v62  ;;  %1927 = vmatprep.mubr.bf16.mxu1 %v3104_v62 }
 0x17b   : > { %1702 = vmatmul.mubr.bf16.gmra.mrb[52].mxu0 %v3102_v60  ;;  %1928 = vmatmul.mubr.bf16.gmra.mrb[52].mxu1 %v3102_v60 }
 0x17c   : > { %1711 = vmatprep.mubr.bf16.mxu0 %v711_v47  ;;  %1937 = vmatprep.mubr.bf16.mxu1 %v711_v47 }
 0x183   : > { %1712 = vmatmul.mubr.bf16.gmra.mrb[56].mxu0 %v3114_v45  ;;  %1938 = vmatmul.mubr.bf16.gmra.mrb[56].mxu1 %v3114_v45 }
 0x184   : > { %1721 = vmatprep.mubr.bf16.mxu0 %v715_v48  ;;  %1947 = vmatprep.mubr.bf16.mxu1 %v715_v48 }
 0x18b   : > { %1722 = vmatmul.mubr.bf16.gmra.mrb[60].mxu0 %v714_v12  ;;  %1948 = vmatmul.mubr.bf16.gmra.mrb[60].mxu1 %v714_v12 }
 0x226   : > { %v1653_v49 = vpop.f32.mrb[32].mxu0  ;;  %v1879_v52 = vpop.f32.mrb[32].mxu1 }
 0x227   : > { %v2452_v29 = vadd.f32 %v1653_v49, %v3150_v25  ;;  %v2484_v13 = vadd.f32 %v1879_v52, %v3153_v27  ;;  %v1655_v60 = vpop.f32.mrb[33].mxu0  ;;  %v1881_v62 = vpop.f32.mrb[33].mxu1 }
 0x228   : > { %v2453_v14 = vadd.f32 %v1655_v60, %v3159_v7  ;;  %v1657_v16 = vpop.f32.mrb[34].mxu0  ;;  %v1883_v17 = vpop.f32.mrb[34].mxu1  ;;  %v2485_v24 = vadd.f32 %v1881_v62, %v3162_v26 }
 0x229   : > { %v1958_v18 = vmax.f32 %v2452_v29, 0.0  ;;  %v2454_v20 = vadd.f32 %v1657_v16, %v3150_v25  ;;  %v1659_v21 = vpop.f32.mrb[35].mxu0  ;;  %v1885_v33 = vpop.f32.mrb[35].mxu1  ;;  %v1960_v22 = vmax.f32 %v2484_v13, 0.0  ;;  %v2486_v30 = vadd.f32 %v1883_v17, %v3153_v27 }
 0x22a   : > { %v1959_v23 = vmax.f32 %v2453_v14, 0.0  ;;  %v2455_v28 = vadd.f32 %v1659_v21, %v3159_v7  ;;  %v2487_v34 = vadd.f32 %v1885_v33, %v3162_v26  ;;  %v1961_v41 = vmax.f32 %v2485_v24, 0.0 }
 0x22b   : > { %v2044_v0 = vmul.f32 %v3166_v11, %v1958_v18  ;;  %v1962_v35 = vmax.f32 %v2454_v20, 0.0  ;;  %v2046_v40 = vmul.f32 %v3174_v19, %v1960_v22  ;;  %v1964_v46 = vmax.f32 %v2486_v30, 0.0 }
 0x22c   : > { %v2045_v31 = vmul.f32 %v3171_v15, %v1959_v23  ;;  %v1963_v32 = vmax.f32 %v2455_v28, 0.0  ;;  %v1965_v58 = vmax.f32 %v2487_v34, 0.0  ;;  %v2047_v8 = vmul.f32 %v3185_v38, %v1961_v41 }
 0x22d   : > { %v2048_v39 = vmul.f32 %v3166_v11, %v1962_v35  ;;  %v2050_v9 = vmul.f32 %v3174_v19, %v1964_v46 }
 0x22e   : > { %v2049_v36 = vmul.f32 %v3171_v15, %v1963_v32  ;;  %v1663_v43 = vpop.f32.mrb[36].mxu0  ;;  %v1889_v44 = vpop.f32.mrb[36].mxu1  ;;  %v2108_v45 = vadd.f32 %v2045_v31, %v2044_v0  ;;  %v2051_v29 = vmul.f32 %v3185_v38, %v1965_v58 }
 0x22f   : > { %v2456_v47 = vadd.f32 %v1663_v43, %v3150_v25  ;;  %v2488_v50 = vadd.f32 %v1889_v44, %v3153_v27  ;;  %v1665_v53 = vpop.f32.mrb[37].mxu0  ;;  %v1891_v37 = vpop.f32.mrb[37].mxu1 }
 0x230   : > { %v2113_v54 = vadd.f32 %v2049_v36, %v2048_v39  ;;  %v2457_v55 = vadd.f32 %v1665_v53, %v3159_v7  ;;  %v1667_v42 = vpop.f32.mrb[38].mxu0  ;;  %v1893_v56 = vpop.f32.mrb[38].mxu1  ;;  %v2109_v57 = vadd.f32 %v2108_v45, %v2046_v40  ;;  %v2489_v12 = vadd.f32 %v1891_v37, %v3162_v26 }
 0x231   : > { %v1966_v59 = vmax.f32 %v2456_v47, 0.0  ;;  %v2458_v61 = vadd.f32 %v1667_v42, %v3150_v25  ;;  %v2490_v63 = vadd.f32 %v1893_v56, %v3153_v27  ;;  %v1669_v1 = vpop.f32.mrb[39].mxu0  ;;  %v1895_v2 = vpop.f32.mrb[39].mxu1  ;;  %v1968_v3 = vmax.f32 %v2488_v50, 0.0 }
 0x232   : > { %v1967_v4 = vmax.f32 %v2457_v55, 0.0  ;;  %v2459_v6 = vadd.f32 %v1669_v1, %v3159_v7  ;;  %v2491_v49 = vadd.f32 %v1895_v2, %v3162_v26  ;;  %v2110_v52 = vadd.f32 %v2109_v57, %v2047_v8 }
 0x233   : > { %v2052_v10 = vmul.f32 %v3166_v11, %v1966_v59  ;;  %v1970_v48 = vmax.f32 %v2458_v61, 0.0  ;;  %v1972_v60 = vmax.f32 %v2490_v63, 0.0  ;;  %v2114_v62 = vadd.f32 %v2113_v54, %v2050_v9 }
 0x234   : > { %v2053_v51 = vmul.f32 %v3171_v15, %v1967_v4  ;;  %v1971_v5 = vmax.f32 %v2459_v6, 0.0  ;;  %v2054_v14 = vmul.f32 %v3174_v19, %v1968_v3  ;;  %2111 = vadd.xlane.f32.xlu0 %v2110_v52  ;;  %v1969_v21 = vmax.f32 %v2489_v12, 0.0 }
 0x235   : > { %v2056_v13 = vmul.f32 %v3166_v11, %v1970_v48  ;;  %v2115_v28 = vadd.f32 %v2114_v62, %v2051_v29  ;;  %v1973_v35 = vmax.f32 %v2491_v49, 0.0  ;;  %v2058_v34 = vmul.f32 %v3174_v19, %v1972_v60 }
 0x236   : > { %v2057_v16 = vmul.f32 %v3171_v15, %v1971_v5  ;;  %v1673_v17 = vpop.f32.mrb[40].mxu0  ;;  %v1899_v18 = vpop.f32.mrb[40].mxu1  ;;  %v2118_v20 = vadd.f32 %v2053_v51, %v2052_v10  ;;  %v2055_v55 = vmul.f32 %v3185_v38, %v1969_v21 }
 0x237   : > { %v2460_v33 = vadd.f32 %v1673_v17, %v3150_v25  ;;  %v2492_v22 = vadd.f32 %v1899_v18, %v3153_v27  ;;  %v1675_v23 = vpop.f32.mrb[41].mxu0  ;;  %v1901_v24 = vpop.f32.mrb[41].mxu1  ;;  %v2059_v42 = vmul.f32 %v3185_v38, %v1973_v35 }
 0x238   : > { %v2123_v0 = vadd.f32 %v2057_v16, %v2056_v13  ;;  %v2461_v30 = vadd.f32 %v1675_v23, %v3159_v7  ;;  %v1677_v31 = vpop.f32.mrb[42].mxu0  ;;  %v1903_v32 = vpop.f32.mrb[42].mxu1  ;;  %v2119_v39 = vadd.f32 %v2118_v20, %v2054_v14  ;;  %v2493_v41 = vadd.f32 %v1901_v24, %v3162_v26  ;;  %2116 = vadd.xlane.f32.xlu0 %v2115_v28 }
 0x239   : > { %v1974_v40 = vmax.f32 %v2460_v33, 0.0  ;;  %v2462_v36 = vadd.f32 %v1677_v31, %v3150_v25  ;;  %v1679_v43 = vpop.f32.mrb[43].mxu0  ;;  %v1905_v44 = vpop.f32.mrb[43].mxu1  ;;  %v1976_v45 = vmax.f32 %v2492_v22, 0.0  ;;  %v2494_v47 = vadd.f32 %v1903_v32, %v3153_v27 }
 0x23a   : > { %v1975_v46 = vmax.f32 %v2461_v30, 0.0  ;;  %v2463_v50 = vadd.f32 %v1679_v43, %v3159_v7  ;;  %v2495_v54 = vadd.f32 %v1905_v44, %v3162_v26  ;;  %v1977_v58 = vmax.f32 %v2493_v41, 0.0 }
 0x23b   : > { %v2060_v53 = vmul.f32 %v3166_v11, %v1974_v40  ;;  %v1978_v37 = vmax.f32 %v2462_v36, 0.0  ;;  %v2120_v61 = vadd.f32 %v2119_v39, %v2055_v55  ;;  %v2124_v63 = vadd.f32 %v2123_v0, %v2058_v34 }
 0x23c   : > { %v2061_v56 = vmul.f32 %v3171_v15, %v1975_v46  ;;  %v1979_v57 = vmax.f32 %v2463_v50, 0.0  ;;  %v2062_v1 = vmul.f32 %v3174_v19, %v1976_v45  ;;  %v1980_v3 = vmax.f32 %v2494_v47, 0.0 }
 0x23d   : > { %v2064_v59 = vmul.f32 %v3166_v11, %v1978_v37  ;;  %v1981_v9 = vmax.f32 %v2495_v54, 0.0  ;;  %2121 = vadd.xlane.f32.xlu1 %v2120_v61  ;;  %v2125_v5 = vadd.f32 %v2124_v63, %v2059_v42  ;;  %v2063_v20 = vmul.f32 %v3185_v38, %v1977_v58 }
 0x23e   : > { %v2128_v2 = vadd.f32 %v2061_v56, %v2060_v53  ;;  %v2065_v4 = vmul.f32 %v3171_v15, %v1979_v57  ;;  %v1683_v6 = vpop.f32.mrb[44].mxu0  ;;  %v1909_v8 = vpop.f32.mrb[44].mxu1  ;;  %v2066_v23 = vmul.f32 %v3174_v19, %v1980_v3 }
 0x23f   : > { %v2464_v10 = vadd.f32 %v1683_v6, %v3150_v25  ;;  %v2496_v12 = vadd.f32 %v1909_v8, %v3153_v27  ;;  %v1685_v48 = vpop.f32.mrb[45].mxu0  ;;  %v1911_v51 = vpop.f32.mrb[45].mxu1  ;;  %v2067_v35 = vmul.f32 %v3185_v38, %v1981_v9 }
 0x240   : > { %v2133_v49 = vadd.f32 %v2065_v4, %v2064_v59  ;;  %v2465_v52 = vadd.f32 %v1685_v48, %v3159_v7  ;;  %v2497_v29 = vadd.f32 %v1911_v51, %v3162_v26  ;;  %v1687_v13 = vpop.f32.mrb[46].mxu0  ;;  %v1913_v60 = vpop.f32.mrb[46].mxu1  ;;  %v2129_v62 = vadd.f32 %v2128_v2, %v2062_v1 }
 0x241   : > { %v1982_v14 = vmax.f32 %v2464_v10, 0.0  ;;  %v2466_v16 = vadd.f32 %v1687_v13, %v3150_v25  ;;  %v1689_v17 = vpop.f32.mrb[47].mxu0  ;;  %v1915_v18 = vpop.f32.mrb[47].mxu1  ;;  %v1984_v21 = vmax.f32 %v2496_v12, 0.0  ;;  %v2498_v0 = vadd.f32 %v1913_v60, %v3153_v27  ;;  %2126 = vadd.xlane.f32.xlu1 %v2125_v5 }
 0x242   : > { %v1983_v33 = vmax.f32 %v2465_v52, 0.0  ;;  %v2467_v22 = vadd.f32 %v1689_v17, %v3159_v7  ;;  %v1985_v31 = vmax.f32 %v2497_v29, 0.0  ;;  %v2499_v34 = vadd.f32 %v1915_v18, %v3162_v26 }
 0x243   : > { %v2068_v24 = vmul.f32 %v3166_v11, %v1982_v14  ;;  %v1986_v28 = vmax.f32 %v2466_v16, 0.0  ;;  %v2130_v40 = vadd.f32 %v2129_v62, %v2063_v20  ;;  %v2134_v41 = vadd.f32 %v2133_v49, %v2066_v23 }
 0x244   : > { %v2069_v30 = vmul.f32 %v3171_v15, %v1983_v33  ;;  %v1987_v32 = vmax.f32 %v2467_v22, 0.0  ;;  %v2070_v36 = vmul.f32 %v3174_v19, %v1984_v21  ;;  %v1988_v47 = vmax.f32 %v2498_v0, 0.0 }
 0x245   : > { %v2072_v39 = vmul.f32 %v3166_v11, %v1986_v28  ;;  %2131 = vadd.xlane.f32.xlu0 %v2130_v40  ;;  %v2135_v37 = vadd.f32 %v2134_v41, %v2067_v35  ;;  %v2071_v61 = vmul.f32 %v3185_v38, %v1985_v31  ;;  %v1989_v63 = vmax.f32 %v2499_v34, 0.0 }
 0x246   : > { %v2138_v43 = vadd.f32 %v2069_v30, %v2068_v24  ;;  %v2073_v44 = vmul.f32 %v3171_v15, %v1987_v32  ;;  %v1693_v45 = vpop.f32.mrb[48].mxu0  ;;  %v1919_v46 = vpop.f32.mrb[48].mxu1  ;;  %v2074_v12 = vmul.f32 %v3174_v19, %v1988_v47 }
 0x247   : > { %v2468_v50 = vadd.f32 %v1693_v45, %v3150_v25  ;;  %v2500_v53 = vadd.f32 %v1919_v46, %v3153_v27  ;;  %v1695_v54 = vpop.f32.mrb[49].mxu0  ;;  %v1921_v55 = vpop.f32.mrb[49].mxu1  ;;  %2136 = vadd.xlane.f32.xlu1 %v2135_v37  ;;  %v2075_v13 = vmul.f32 %v3185_v38, %v1989_v63 }
 0x248   : > { %v2143_v42 = vadd.f32 %v2073_v44, %v2072_v39  ;;  %v2469_v56 = vadd.f32 %v1695_v54, %v3159_v7  ;;  %v1697_v57 = vpop.f32.mrb[50].mxu0  ;;  %v1923_v58 = vpop.f32.mrb[50].mxu1  ;;  %v2139_v59 = vadd.f32 %v2138_v43, %v2070_v36  ;;  %v2501_v9 = vadd.f32 %v1921_v55, %v3162_v26 }
 0x249   : > { %v1990_v1 = vmax.f32 %v2468_v50, 0.0  ;;  %v2470_v2 = vadd.f32 %v1697_v57, %v3150_v25  ;;  %v1699_v3 = vpop.f32.mrb[51].mxu0  ;;  %v1925_v4 = vpop.f32.mrb[51].mxu1  ;;  %v1992_v6 = vmax.f32 %v2500_v53, 0.0  ;;  %v2502_v5 = vadd.f32 %v1923_v58, %v3153_v27 }
 0x24a   : > { %v1991_v8 = vmax.f32 %v2469_v56, 0.0  ;;  %v2471_v10 = vadd.f32 %v1699_v3, %v3159_v7  ;;  %v2503_v29 = vadd.f32 %v1925_v4, %v3162_v26  ;;  %v2140_v62 = vadd.f32 %v2139_v59, %v2071_v61 }
 0x24b   : > { %v2076_v48 = vmul.f32 %v3166_v11, %v1990_v1  ;;  %v1994_v51 = vmax.f32 %v2470_v2, 0.0  ;;  %v2144_v14 = vadd.f32 %v2143_v42, %v2074_v12  ;;  %v2078_v16 = vmul.f32 %v3174_v19, %v1992_v6 }
 0x24c   : > { %v2077_v49 = vmul.f32 %v3171_v15, %v1991_v8  ;;  %v1995_v52 = vmax.f32 %v2471_v10, 0.0  ;;  %v1993_v18 = vmax.f32 %v2501_v9, 0.0  ;;  %v1996_v22 = vmax.f32 %v2502_v5, 0.0  ;;  %2141 = vadd.xlane.f32.xlu0 %v2140_v62 }
 0x24d   : > { %v2080_v60 = vmul.f32 %v3166_v11, %v1994_v51  ;;  %v2145_v28 = vadd.f32 %v2144_v14, %v2075_v13  ;;  %v1997_v31 = vmax.f32 %v2503_v29, 0.0 }
 0x24e   : > { %v2148_v17 = vadd.f32 %v2077_v49, %v2076_v48  ;;  %v2081_v20 = vmul.f32 %v3171_v15, %v1995_v52  ;;  %v1703_v21 = vpop.f32.mrb[52].mxu0  ;;  %v1929_v33 = vpop.f32.mrb[52].mxu1  ;;  %v2079_v46 = vmul.f32 %v3185_v38, %v1993_v18  ;;  %v2082_v37 = vmul.f32 %v3174_v19, %v1996_v22 }
 0x24f   : > { %v2472_v23 = vadd.f32 %v1703_v21, %v3150_v25  ;;  %v2504_v24 = vadd.f32 %v1929_v33, %v3153_v27  ;;  %v1705_v0 = vpop.f32.mrb[53].mxu0  ;;  %v1931_v35 = vpop.f32.mrb[53].mxu1  ;;  %2146 = vadd.xlane.f32.xlu1 %v2145_v28  ;;  %v2083_v56 = vmul.f32 %v3185_v38, %v1997_v31 }
 0x250   : > { %v2153_v30 = vadd.f32 %v2081_v20, %v2080_v60  ;;  %v2473_v32 = vadd.f32 %v1705_v0, %v3159_v7  ;;  %v1707_v39 = vpop.f32.mrb[54].mxu0  ;;  %v1933_v34 = vpop.f32.mrb[54].mxu1  ;;  %v2149_v40 = vadd.f32 %v2148_v17, %v2078_v16  ;;  %v2505_v36 = vadd.f32 %v1931_v35, %v3162_v26 }
 0x251   : > { %v1998_v41 = vmax.f32 %v2472_v23, 0.0  ;;  %v2474_v43 = vadd.f32 %v1707_v39, %v3150_v25  ;;  %v1709_v44 = vpop.f32.mrb[55].mxu0  ;;  %v1935_v45 = vpop.f32.mrb[55].mxu1  ;;  %v2000_v47 = vmax.f32 %v2504_v24, 0.0  ;;  %v2506_v42 = vadd.f32 %v1933_v34, %v3153_v27 }
 0x252   : > { %v1999_v50 = vmax.f32 %v2473_v32, 0.0  ;;  %v2475_v53 = vadd.f32 %v1709_v44, %v3159_v7  ;;  %v2507_v59 = vadd.f32 %v1935_v45, %v3162_v26  ;;  %v2001_v61 = vmax.f32 %v2505_v36, 0.0 }
 0x253   : > { %v2084_v54 = vmul.f32 %v3166_v11, %v1998_v41  ;;  %v2002_v55 = vmax.f32 %v2474_v43, 0.0  ;;  %v2150_v1 = vadd.f32 %v2149_v40, %v2079_v46  ;;  %v2154_v2 = vadd.f32 %v2153_v30, %v2082_v37 }
 0x254   : > { %v2085_v57 = vmul.f32 %v3171_v15, %v1999_v50  ;;  %v2003_v58 = vmax.f32 %v2475_v53, 0.0  ;;  %v2086_v3 = vmul.f32 %v3174_v19, %v2000_v47  ;;  %v2004_v10 = vmax.f32 %v2506_v42, 0.0 }
 0x255   : > { %v2088_v63 = vmul.f32 %v3166_v11, %v2002_v55  ;;  %2151 = vadd.xlane.f32.xlu0 %v2150_v1  ;;  %v2155_v51 = vadd.f32 %v2154_v2, %v2083_v56  ;;  %v2005_v29 = vmax.f32 %v2507_v59, 0.0  ;;  %v2087_v16 = vmul.f32 %v3185_v38, %v2001_v61 }
 0x256   : > { %v2158_v4 = vadd.f32 %v2085_v57, %v2084_v54  ;;  %v2089_v6 = vmul.f32 %v3171_v15, %v2003_v58  ;;  %v1713_v8 = vpop.f32.mrb[56].mxu0  ;;  %v1939_v9 = vpop.f32.mrb[56].mxu1  ;;  %v2090_v28 = vmul.f32 %v3174_v19, %v2004_v10 }
 0x257   : > { %v2476_v12 = vadd.f32 %v1713_v8, %v3150_v25  ;;  %v2508_v48 = vadd.f32 %v1939_v9, %v3153_v27  ;;  %v1715_v5 = vpop.f32.mrb[57].mxu0  ;;  %v1941_v49 = vpop.f32.mrb[57].mxu1  ;;  %2156 = vadd.xlane.f32.xlu1 %v2155_v51  ;;  %v2091_v31 = vmul.f32 %v3185_v38, %v2005_v29 }
 0x258   : > { %v2163_v52 = vadd.f32 %v2089_v6, %v2088_v63  ;;  %v2477_v13 = vadd.f32 %v1715_v5, %v3159_v7  ;;  %v1717_v60 = vpop.f32.mrb[58].mxu0  ;;  %v1943_v62 = vpop.f32.mrb[58].mxu1  ;;  %v2159_v14 = vadd.f32 %v2158_v4, %v2086_v3  ;;  %v2509_v23 = vadd.f32 %v1941_v49, %v3162_v26 }
 0x259   : > { %v2006_v17 = vmax.f32 %v2476_v12, 0.0  ;;  %v2478_v18 = vadd.f32 %v1717_v60, %v3150_v25  ;;  %v1719_v20 = vpop.f32.mrb[59].mxu0  ;;  %v1945_v21 = vpop.f32.mrb[59].mxu1  ;;  %v2008_v33 = vmax.f32 %v2508_v48, 0.0  ;;  %v2510_v30 = vadd.f32 %v1943_v62, %v3153_v27 }
 0x25a   : > { %v2007_v22 = vmax.f32 %v2477_v13, 0.0  ;;  %v2479_v24 = vadd.f32 %v1719_v20, %v3159_v7  ;;  %v2511_v40 = vadd.f32 %v1945_v21, %v3162_v26  ;;  %v2160_v41 = vadd.f32 %v2159_v14, %v2087_v16 }
 0x25b   : > { %v2092_v0 = vmul.f32 %v3166_v11, %v2006_v17  ;;  %v2010_v35 = vmax.f32 %v2478_v18, 0.0  ;;  %v2164_v36 = vadd.f32 %v2163_v52, %v2090_v28  ;;  %v2094_v43 = vmul.f32 %v3174_v19, %v2008_v33 }
 0x25c   : > { %v2093_v32 = vmul.f32 %v3171_v15, %v2007_v22  ;;  %v2011_v39 = vmax.f32 %v2479_v24, 0.0  ;;  %v2009_v45 = vmax.f32 %v2509_v23, 0.0  ;;  %v2012_v53 = vmax.f32 %v2510_v30, 0.0  ;;  %2161 = vadd.xlane.f32.xlu0 %v2160_v41 }
 0x25d   : > { %v2096_v34 = vmul.f32 %v3166_v11, %v2010_v35  ;;  %v2165_v55 = vadd.f32 %v2164_v36, %v2091_v31  ;;  %v2013_v2 = vmax.f32 %v2511_v40, 0.0 }
 0x25e   : > { %v2168_v44 = vadd.f32 %v2093_v32, %v2092_v0  ;;  %v2097_v46 = vmul.f32 %v3171_v15, %v2011_v39  ;;  %v1723_v47 = vpop.f32.mrb[60].mxu0  ;;  %v1949_v50 = vpop.f32.mrb[60].mxu1  ;;  %v2095_v5 = vmul.f32 %v3185_v38, %v2009_v45  ;;  %v2098_v49 = vmul.f32 %v3174_v19, %v2012_v53 }
 0x25f   : > { %v2480_v37 = vadd.f32 %v1723_v47, %v3150_v25  ;;  %v2512_v54 = vadd.f32 %v1949_v50, %v3153_v27  ;;  %v1725_v42 = vpop.f32.mrb[61].mxu0  ;;  %v1951_v56 = vpop.f32.mrb[61].mxu1  ;;  %2166 = vadd.xlane.f32.xlu1 %v2165_v55  ;;  %v2099_v62 = vmul.f32 %v3185_v38, %v2013_v2 }
 0x260   : > { %v2173_v57 = vadd.f32 %v2097_v46, %v2096_v34  ;;  %v2481_v58 = vadd.f32 %v1725_v42, %v3159_v7  ;;  %v2513_v59 = vadd.f32 %v1951_v56, %v3162_v26  ;;  %v1727_v61 = vpop.f32.mrb[62].mxu0  ;;  %v1953_v63 = vpop.f32.mrb[62].mxu1  ;;  %v2169_v1 = vadd.f32 %v2168_v44, %v2094_v43 }
 0x261   : > { %v2014_v3 = vmax.f32 %v2480_v37, 0.0  ;;  %v2482_v4 = vadd.f32 %v1727_v61, %v3150_v25  ;;  %v2514_v6 = vadd.f32 %v1953_v63, %v3153_v27  ;;  %v1729_v8 = vpop.f32.mrb[63].mxu0  ;;  %v1955_v9 = vpop.f32.mrb[63].mxu1  ;;  %v2016_v10 = vmax.f32 %v2512_v54, 0.0 }
 0x262   : > { %v2015_v12 = vmax.f32 %v2481_v58, 0.0  ;;  %v2483_v48 = vadd.f32 %v1729_v8, %v3159_v7  ;;  %v2515_v51 = vadd.f32 %v1955_v9, %v3162_v26  ;;  %v2017_v25 = vmax.f32 %v2513_v59, 0.0 }
 0x263   : > { %v2100_v52 = vmul.f32 %v3166_v11, %v2014_v3  ;;  %v2018_v29 = vmax.f32 %v2482_v4, 0.0  ;;  %v2020_v60 = vmax.f32 %v2514_v6, 0.0  ;;  %v2170_v16 = vadd.f32 %v2169_v1, %v2095_v5 }
 0x264   : > { %v2101_v13 = vmul.f32 %v3171_v15, %v2015_v12  ;;  %v2019_v27 = vmax.f32 %v2483_v48, 0.0  ;;  %v2174_v7 = vadd.f32 %v2173_v57, %v2098_v49  ;;  %v2102_v26 = vmul.f32 %v3174_v19, %v2016_v10 }
 0x265   : > { %v2104_v14 = vmul.f32 %v3166_v11, %v2018_v29  ;;  %v2021_v20 = vmax.f32 %v2515_v51, 0.0  ;;  %2171 = vadd.xlane.f32.xlu0 %v2170_v16  ;;  %v2103_v33 = vmul.f32 %v3185_v38, %v2017_v25  ;;  %v2106_v22 = vmul.f32 %v3174_v19, %v2020_v60 }
 0x266   : > { %v2178_v17 = vadd.f32 %v2101_v13, %v2100_v52  ;;  %v2105_v18 = vmul.f32 %v3171_v15, %v2019_v27  ;;  %v2175_v21 = vadd.f32 %v2174_v7, %v2099_v62  ;;  %v2189_v15 = vstv %s2188_s17 }
 0x267   : > { %v2107_v11 = vmul.f32 %v3185_v38, %v2021_v20 }
 0x268   : > { %v2183_v23 = vadd.f32 %v2105_v18, %v2104_v14  ;;  %v2179_v24 = vadd.f32 %v2178_v17, %v2102_v26  ;;  %2176 = vadd.xlane.f32.xlu1 %v2175_v21 }
 0x26a   : > { %v2180_v28 = vadd.f32 %v2179_v24, %v2103_v33  ;;  %v2184_v0 = vadd.f32 %v2183_v23, %v2106_v22 }
 0x26c   : > { %2181 = vadd.xlane.f32.xlu0 %v2180_v28  ;;  %v2185_v35 = vadd.f32 %v2184_v0, %v2107_v11 }
 0x26e   : > { %2186 = vadd.xlane.f32.xlu1 %v2185_v35 }
 0x2c1   : > { %v2112_v19 = vpop.xlane.xlu0 %2111 }
 0x2c2   : > { %v2190_v38 = vadd.f32 %v2189_v15, %v2112_v19 }
 0x2c4   : > { %2207 = vst.msk [vmem:[%s3309_s20] sm:$0xff] %vm2206_vm1, %v2190_v38 }
 0x2c5   : > { %v2117_v30 = vpop.xlane.xlu0 %2116 }
 0x2c6   : > { %v2191_v31 = vadd.f32 %v2189_v15, %v2117_v30 }
 0x2c8   : > { %2208 = vst.msk [vmem:[%s3309_s20 + $0x8] sm:$0xff] %vm2206_vm1, %v2191_v31 }
 0x2ca   : > { %v2122_v32 = vpop.xlane.xlu1 %2121 }
 0x2cb   : > { %v2192_v39 = vadd.f32 %v2189_v15, %v2122_v32 }
 0x2cd   : > { %2209 = vst.msk [vmem:[%s3309_s20 + $0x10] sm:$0xff] %vm2206_vm1, %v2192_v39 }
 0x2ce   : > { %v2127_v34 = vpop.xlane.xlu1 %2126 }
 0x2cf   : > { %v2193_v40 = vadd.f32 %v2189_v15, %v2127_v34 }
 0x2d1   : > { %2210 = vst.msk [vmem:[%s3309_s20 + $0x18] sm:$0xff] %vm2206_vm1, %v2193_v40 }
 0x2d2   : > { %v2132_v41 = vpop.xlane.xlu0 %2131 }
 0x2d3   : > { %v2194_v36 = vadd.f32 %v2189_v15, %v2132_v41 }
 0x2d4   : > { %v2137_v43 = vpop.xlane.xlu1 %2136 }
 0x2d5   : > { %2211 = vst.msk [vmem:[%s3309_s20 + $0x20] sm:$0xff] %vm2206_vm1, %v2194_v36  ;;  %v2195_v44 = vadd.f32 %v2189_v15, %v2137_v43 }
 0x2d7   : > { %2212 = vst.msk [vmem:[%s3309_s20 + $0x28] sm:$0xff] %vm2206_vm1, %v2195_v44 }
 0x2d9   : > { %v2142_v45 = vpop.xlane.xlu0 %2141 }
 0x2da   : > { %v2196_v46 = vadd.f32 %v2189_v15, %v2142_v45 }
 0x2dc   : > { %v2147_v47 = vpop.xlane.xlu1 %2146  ;;  %2213 = vst.msk [vmem:[%s3309_s20 + $0x30] sm:$0xff] %vm2206_vm1, %v2196_v46 }
 0x2dd   : > { %v2197_v50 = vadd.f32 %v2189_v15, %v2147_v47 }
 0x2df   : > { %2214 = vst.msk [vmem:[%s3309_s20 + $0x38] sm:$0xff] %vm2206_vm1, %v2197_v50 }
 0x2e2   : > { %v2152_v53 = vpop.xlane.xlu0 %2151 }
 0x2e3   : > { %v2198_v37 = vadd.f32 %v2189_v15, %v2152_v53 }
 0x2e4   : > { %v2157_v54 = vpop.xlane.xlu1 %2156 }
 0x2e5   : > { %2215 = vst.msk [vmem:[%s3309_s20 + $0x40] sm:$0xff] %vm2206_vm1, %v2198_v37  ;;  %v2199_v55 = vadd.f32 %v2189_v15, %v2157_v54 }
 0x2e7   : > { %2216 = vst.msk [vmem:[%s3309_s20 + $0x48] sm:$0xff] %vm2206_vm1, %v2199_v55 }
 0x2e9   : > { %v2162_v42 = vpop.xlane.xlu0 %2161 }
 0x2ea   : > { %v2200_v56 = vadd.f32 %v2189_v15, %v2162_v42 }
 0x2ec   : > { %v2167_v57 = vpop.xlane.xlu1 %2166  ;;  %2217 = vst.msk [vmem:[%s3309_s20 + $0x50] sm:$0xff] %vm2206_vm1, %v2200_v56 }
 0x2ed   : > { %v2201_v58 = vadd.f32 %v2189_v15, %v2167_v57 }
 0x2ef   : > { %2218 = vst.msk [vmem:[%s3309_s20 + $0x58] sm:$0xff] %vm2206_vm1, %v2201_v58 }
 0x2f2   : > { %v2172_v59 = vpop.xlane.xlu0 %2171 }
 0x2f3   : > { %v2202_v61 = vadd.f32 %v2189_v15, %v2172_v59 }
 0x2f5   : > { %v2177_v63 = vpop.xlane.xlu1 %2176  ;;  %2219 = vst.msk [vmem:[%s3309_s20 + $0x60] sm:$0xff] %vm2206_vm1, %v2202_v61 }
 0x2f6   : > { %v2203_v1 = vadd.f32 %v2189_v15, %v2177_v63 }
 0x2f8   : > { %2220 = vst.msk [vmem:[%s3309_s20 + $0x68] sm:$0xff] %vm2206_vm1, %v2203_v1 }
 0x2f9   : > { %v2182_v2 = vpop.xlane.xlu0 %2181 }
 0x2fa   : > { %v2204_v3 = vadd.f32 %v2189_v15, %v2182_v2 }
 0x2fb   : > { %v2187_v4 = vpop.xlane.xlu1 %2186 }
 0x2fc   : > { %2221 = vst.msk [vmem:[%s3309_s20 + $0x70] sm:$0xff] %vm2206_vm1, %v2204_v3  ;;  %v2205_v6 = vadd.f32 %v2189_v15, %v2187_v4 }
 0x2fe   : > { %2222 = vst.msk [vmem:[%s3309_s20 + $0x78] sm:$0xff] %vm2206_vm1, %v2205_v6 }
 0x2ff PF: > { %s19_s26 = sadd.s32 1, %s2838_s26  }
 0x300   : > { %p16_p3 = scmp.ge.s32.totalorder %s19_s26, 5  }
 0x302   :  { %18 = sbr.rel (!%p16_p3) target bundleno = 3 (0x3), region = 83 }
 0x309   :  { %2245 = vsyncpa [#allocation4], 1 }
 0x30a   :  { %2247 = vsyncpa [#allocation4 + $0x1], 1 }

</bundles_post_ra>
